<compile_context>
chip_gen: v7x
topology: tpu7x:2x2x1
jax: 0.10.0
libtpu: 0.0.40
codegen_flags: <defaults>
</compile_context>

<pallas_src>
from functools import partial

import jax
import jax.numpy as jnp
from jax.experimental import pallas as pl
from jax.experimental.pallas import tpu as pltpu


def _round_up(x, m):
    return (x + m - 1) // m * m


def _cdiv(a, b):
    return -(-a // b)


def _direct_conv_kernel(x_ref, w_ref, s_ref, o_ref, *, K, TH, WP, activation):
    """Direct conv + folded-BN shift + activation for one halo'd row tile.

    x_ref: (TH + 2*pad, WP + 2*pad, Cin)   halo'd NHWC input tile (compute dtype)
    w_ref: (K, K, Cin, Cout_pad)           BN-scale-folded weights (compute dtype)
    s_ref: (1, Cout_pad)                   folded shift = bias*scale + beta - mean*scale
    o_ref: (TH, WP, Cout_pad)              output tile (lane-dense last dim)
    """
    cin = x_ref.shape[-1]
    cout = o_ref.shape[-1]
    acc = jnp.zeros((TH * WP, cout), jnp.float32)
    # Unrolled K*K shifted MXU matmuls (contraction = Cin), f32 accumulation.
    for kh in range(K):
        for kw in range(K):
            lhs = x_ref[pl.ds(kh, TH), pl.ds(kw, WP), :].reshape(TH * WP, cin)
            acc = acc + jnp.dot(lhs, w_ref[kh, kw, :, :],
                                preferred_element_type=jnp.float32)
    acc = acc + s_ref[...]                       # folded conv-bias + BN shift
    if activation == "relu":
        acc = jnp.maximum(acc, 0.0)
    elif activation == "relu6":
        acc = jnp.clip(acc, 0.0, 6.0)
    o_ref[...] = acc.reshape(TH, WP, cout).astype(o_ref.dtype)


def conv2d_norm_activation_nhwc(x_nhwc, weight, bias=None,
                                norm_scale=None, norm_shift=None,
                                activation="relu",
                                compute_dtype=jnp.bfloat16,
                                out_dtype=None,
                                rows_per_tile=1024):
    """y = act(norm(conv2d(x))), 'same' padding (odd K). NHWC in / NHWC out.

    x_nhwc: (N, H, W, Cin); weight: (Cout, Cin, K, K) (PyTorch OIHW layout);
    bias: (Cout,) or None; norm_scale/norm_shift: folded BatchNorm2d (eval mode)
    per-channel affine, or None.
    """
    N, H, W, Cin = x_nhwc.shape
    Cout, Cin_w, K, K2 = weight.shape
    assert Cin_w == Cin and K == K2
    # padding=K//2 only reproduces PyTorch "same" output for odd K.
    assert K % 2 == 1, "even kernel sizes change the output size in nn.Conv2d"
    pad = K // 2
    out_dtype = x_nhwc.dtype if out_dtype is None else out_dtype

    # ---------------- parameter folding (tiny, done once in plain JAX) -------
    scale = (jnp.ones((Cout,), jnp.float32) if norm_scale is None
             else norm_scale.astype(jnp.float32))
    shift = (jnp.zeros((Cout,), jnp.float32) if norm_shift is None
             else norm_shift.astype(jnp.float32))
    b = jnp.zeros((Cout,), jnp.float32) if bias is None else bias.astype(jnp.float32)

    Cout_pad = _round_up(Cout, 128)              # lane-dense output block
    # (Cout,Cin,K,K) -> (K,K,Cin,Cout); fold BN scale into the weights and the
    # conv bias into the shift, so the kernel epilogue is a single add (+clip).
    # NOTE: the BN scale is folded *before* the bf16 cast (bf16 path rounds
    # scale*W rather than W); covered by the bf16 tolerance.
    w_kkio = jnp.transpose(weight, (2, 3, 1, 0)).astype(jnp.float32) * scale
    w_kkio = jnp.pad(w_kkio, ((0, 0), (0, 0), (0, 0), (0, Cout_pad - Cout)))
    w_kkio = w_kkio.astype(compute_dtype)
    s_vec = jnp.pad(b * scale + shift, (0, Cout_pad - Cout)).reshape(1, Cout_pad)

    # ---------------- tile geometry & per-generation VMEM budget -------------
    WP = _round_up(W, 16)                        # sublane-clean width (bf16 & f32)
    WH = WP + 2 * pad                            # halo'd width
    csize = jnp.dtype(compute_dtype).itemsize
    osize = jnp.dtype(out_dtype).itemsize
    try:
        vmem_cap = int(pltpu.get_tpu_info().vmem_capacity_bytes)
    except Exception:
        vmem_cap = 64 * 1024 * 1024              # safe floor for every generation
    # <= ~48 MB scoped on v7x (64 MiB/TC); up to 96 MB on v5e/v6e (128 MiB).
    vmem_limit = min(96 * 1024 * 1024, (vmem_cap * 3) // 4)
    budget = vmem_limit // 2                     # headroom for internal scratch

    cin_vmem = _round_up(Cin, 128)               # lane padding of the VMEM tile

    def tile_bytes(th):
        in_b = 2 * (th + 2 * pad) * _round_up(WH, 16) * cin_vmem * csize  # dbl buf
        out_b = 2 * th * WP * Cout_pad * osize                            # dbl buf
        # Weights are loop-invariant (constant index_map) but still double
        # buffered by the default pipeline; account for both copies.
        w_b = 2 * K * K * _round_up(Cin, 16) * Cout_pad * csize
        acc_b = th * WP * Cout_pad * 4                                    # f32 acc
        lhs_b = th * WP * cin_vmem * csize                                # shifted slab
        return in_b + out_b + w_b + acc_b + lhs_b

    th_target = min(H, max(1, rows_per_tile // WP))
    n_h = _cdiv(H, th_target)
    TH = _cdiv(H, n_h)
    while TH > 1 and tile_bytes(TH) > budget:    # shrink the row tile if needed
        n_h += 1
        TH = _cdiv(H, n_h)
    H_t = n_h * TH

    # -------- halo row tiles (cast to compute dtype FIRST, then pad/gather) ---
    x = x_nhwc.astype(compute_dtype)
    x_p = jnp.pad(x, ((0, 0), (pad, H_t - H + pad), (pad, WP - W + pad), (0, 0)))
    if n_h == 1:
        tiles = x_p                                            # (N, TH+2p, WH, Cin)
    else:
        # Lightly overlapping (2*pad rows) halo tiles: ~(TH+2p)/TH HBM overhead
        # instead of im2col's K^2 blow-up.
        # TODO(synk): a manual-DMA halo fetch (memory_space=pl.ANY) inside the
        # kernel would remove this remaining wrapper-side pass entirely.
        row_idx = (jnp.arange(n_h)[:, None] * TH
                   + jnp.arange(TH + 2 * pad)[None, :])
        tiles = x_p[:, row_idx].reshape(N * n_h, TH + 2 * pad, WH, Cin)
    NT = N * n_h

    kernel = partial(_direct_conv_kernel, K=K, TH=TH, WP=WP, activation=activation)

    cost = pl.CostEstimate(
        flops=2 * NT * TH * WP * K * K * Cin * Cout_pad,
        transcendentals=0,
        bytes_accessed=(NT * (TH + 2 * pad) * WH * Cin * csize
                        + K * K * Cin * Cout_pad * csize
                        + NT * TH * WP * Cout_pad * osize))

    out = pl.pallas_call(
        kernel,
        out_shape=jax.ShapeDtypeStruct((NT, TH, WP, Cout_pad), out_dtype),
        grid_spec=pltpu.PrefetchScalarGridSpec(
            num_scalar_prefetch=0,
            grid=(NT,),                                        # row tiles, parallel
            in_specs=[
                pl.BlockSpec((None, TH + 2 * pad, WH, Cin), lambda t: (t, 0, 0, 0)),
                pl.BlockSpec((K, K, Cin, Cout_pad), lambda t: (0, 0, 0, 0)),
                pl.BlockSpec((1, Cout_pad), lambda t: (0, 0)),
            ],
            out_specs=pl.BlockSpec((None, TH, WP, Cout_pad), lambda t: (t, 0, 0, 0)),
        ),
        compiler_params=pltpu.CompilerParams(
            dimension_semantics=("parallel",),
            vmem_limit_bytes=vmem_limit),
        cost_estimate=cost,
    )(tiles, w_kkio, s_vec)

    out = out.reshape(N, H_t, WP, Cout_pad)[:, :H, :W, :Cout]
    return out


def conv2d_norm_activation(x_nchw, weight, bias=None,
                           norm_scale=None, norm_shift=None,
                           activation="relu",
                           compute_dtype=jnp.bfloat16,
                           out_dtype=None,
                           rows_per_tile=1024):
    """NCHW convenience wrapper mirroring the PyTorch module's layout.

    Prefer conv2d_norm_activation_nhwc and keep the whole FPN/head stack in
    NHWC so the layout conversion is paid once per network, not per layer.
    """
    x_nhwc = jnp.transpose(x_nchw, (0, 2, 3, 1))
    y = conv2d_norm_activation_nhwc(x_nhwc, weight, bias, norm_scale, norm_shift,
                                    activation, compute_dtype, out_dtype,
                                    rows_per_tile)
    return jnp.transpose(y, (0, 3, 1, 2))


def _reference(x_nchw, weight, bias, scale, shift, activation):
    K = weight.shape[2]
    y = jax.lax.conv_general_dilated(
        x_nchw, weight, window_strides=(1, 1),
        padding=[(K // 2, K // 2), (K // 2, K // 2)],
        dimension_numbers=("NCHW", "OIHW", "NCHW"))
    y = y + bias[None, :, None, None]
    y = y * scale[None, :, None, None] + shift[None, :, None, None]
    if activation == "relu":
        y = jnp.maximum(y, 0.0)
    elif activation == "relu6":
        y = jnp.clip(y, 0.0, 6.0)
    return y


if __name__ == "__main__":
    # Module config:  Conv2dNormActivation(in=4, out=8, kernel_size=3,
    #                                      norm_layer=BatchNorm2d (eval),
    #                                      activation_layer=ReLU6)
    N, Cin, H, W = 2, 4, 16, 16
    Cout, K = 8, 3

    key = jax.random.PRNGKey(0)
    kx, kw, kb, kg, kbt, km, kv = jax.random.split(key, 7)

    x = jax.random.normal(kx, (N, Cin, H, W), jnp.float32)
    weight = jax.random.normal(kw, (Cout, Cin, K, K), jnp.float32) * 0.1
    bias = jax.random.normal(kb, (Cout,), jnp.float32) * 0.1

    # BatchNorm2d (eval mode) parameters, folded to per-channel scale/shift.
    gamma = 1.0 + 0.1 * jax.random.normal(kg, (Cout,), jnp.float32)
    beta = 0.1 * jax.random.normal(kbt, (Cout,), jnp.float32)
    running_mean = 0.1 * jax.random.normal(km, (Cout,), jnp.float32)
    running_var = jnp.abs(1.0 + 0.1 * jax.random.normal(kv, (Cout,), jnp.float32))
    eps = 1e-5
    norm_scale = gamma / jnp.sqrt(running_var + eps)
    norm_shift = beta - running_mean * norm_scale

    ref = _reference(x, weight, bias, norm_scale, norm_shift, "relu6")

    # Exact-ish f32 MXU operands (single whole-image tile per grid step).
    out_f32 = conv2d_norm_activation(x, weight, bias, norm_scale, norm_shift,
                                     activation="relu6",
                                     compute_dtype=jnp.float32)
    out_f32 = jax.block_until_ready(out_f32)
    assert out_f32.shape == (N, Cout, H, W)
    assert jnp.allclose(out_f32, ref, rtol=1e-4, atol=1e-4), "f32 mismatch vs reference"

    # Default: bf16 MXU operands with f32 accumulation (all generations).
    out_bf16 = conv2d_norm_activation(x, weight, bias, norm_scale, norm_shift,
                                      activation="relu6")
    out_bf16 = jax.block_until_ready(out_bf16)
    assert jnp.allclose(out_bf16, ref, rtol=5e-2, atol=5e-2), "bf16 mismatch vs reference"

    # Force the multi-row-tile (halo) path to exercise the tiled geometry.
    out_tiled = conv2d_norm_activation(x, weight, bias, norm_scale, norm_shift,
                                       activation="relu6",
                                       compute_dtype=jnp.float32,
                                       rows_per_tile=64)
    out_tiled = jax.block_until_ready(out_tiled)
    assert jnp.allclose(out_tiled, ref, rtol=1e-4, atol=1e-4), "tiled mismatch vs reference"

    print("KERNEL_OK")
</pallas_src>

<mosaic_0001>
module attributes {stable_mosaic.version = 11 : i64} {
  func.func @_direct_conv_kernel(%arg0: i32, %arg1: memref<1x18x18x4xf32, #tpu.memory_space<vmem>>, %arg2: memref<3x3x4x128xf32, #tpu.memory_space<vmem>>, %arg3: memref<1x128xf32, #tpu.memory_space<vmem>>, %arg4: memref<1x16x16x128xf32, #tpu.memory_space<vmem>>) attributes {dimension_semantics = [#tpu.dimension_semantics<parallel>], iteration_bounds = array<i64: 2>, scalar_prefetch = 0 : i64, scratch_operands = 0 : i64, tpu.core_type = #tpu.core_type<tc>, window_params = [{transform_indices = @transform_0, window_bounds = array<i64: 1, 18, 18, 4>}, {pipeline_mode = #tpu.pipeline_mode<synchronous>, transform_indices = @transform_1, window_bounds = array<i64: 3, 3, 4, 128>}, {pipeline_mode = #tpu.pipeline_mode<synchronous>, transform_indices = @transform_2, window_bounds = array<i64: 1, 128>}, {transform_indices = @transform_3, window_bounds = array<i64: 1, 16, 16, 128>}]} {
    %cst = arith.constant 0.000000e+00 : f32
    %0 = vector.broadcast %cst : f32 to vector<256x128xf32>
    %c0 = arith.constant 0 : index
    %c0_0 = arith.constant 0 : index
    %c0_1 = arith.constant 0 : index
    %c0_2 = arith.constant 0 : index
    %1 = vector.load %arg1[%c0, %c0_0, %c0_1, %c0_2] : memref<1x18x18x4xf32, #tpu.memory_space<vmem>>, vector<1x16x16x4xf32>
    %2 = vector.shape_cast %1 : vector<1x16x16x4xf32> to vector<16x16x4xf32>
    %3 = vector.shape_cast %2 : vector<16x16x4xf32> to vector<256x4xf32>
    %c0_3 = arith.constant 0 : index
    %c0_4 = arith.constant 0 : index
    %c0_5 = arith.constant 0 : index
    %c0_6 = arith.constant 0 : index
    %4 = vector.load %arg2[%c0_3, %c0_4, %c0_5, %c0_6] : memref<3x3x4x128xf32, #tpu.memory_space<vmem>>, vector<1x1x4x128xf32>
    %5 = vector.shape_cast %4 : vector<1x1x4x128xf32> to vector<4x128xf32>
    %cst_7 = arith.constant dense<0.000000e+00> : vector<256x128xf32>
    %6 = tpu.matmul %3, %5, %cst_7 {dimension_numbers = #tpu.dot_dimension_numbers<[1], [0], [0], [1], [0, 0, 1, 1], [], []>} : vector<256x4xf32>, vector<4x128xf32>, vector<256x128xf32> -> vector<256x128xf32>
    %7 = arith.addf %0, %6 : vector<256x128xf32>
    %c0_8 = arith.constant 0 : index
    %c0_9 = arith.constant 0 : index
    %c1 = arith.constant 1 : index
    %c0_10 = arith.constant 0 : index
    %8 = vector.load %arg1[%c0_8, %c0_9, %c1, %c0_10] : memref<1x18x18x4xf32, #tpu.memory_space<vmem>>, vector<1x16x16x4xf32>
    %9 = vector.shape_cast %8 : vector<1x16x16x4xf32> to vector<16x16x4xf32>
    %10 = vector.shape_cast %9 : vector<16x16x4xf32> to vector<256x4xf32>
    %c0_11 = arith.constant 0 : index
    %c1_12 = arith.constant 1 : index
    %c0_13 = arith.constant 0 : index
    %c0_14 = arith.constant 0 : index
    %11 = vector.load %arg2[%c0_11, %c1_12, %c0_13, %c0_14] : memref<3x3x4x128xf32, #tpu.memory_space<vmem>>, vector<1x1x4x128xf32>
    %12 = vector.shape_cast %11 : vector<1x1x4x128xf32> to vector<4x128xf32>
    %cst_15 = arith.constant dense<0.000000e+00> : vector<256x128xf32>
    %13 = tpu.matmul %10, %12, %cst_15 {dimension_numbers = #tpu.dot_dimension_numbers<[1], [0], [0], [1], [0, 0, 1, 1], [], []>} : vector<256x4xf32>, vector<4x128xf32>, vector<256x128xf32> -> vector<256x128xf32>
    %14 = arith.addf %7, %13 : vector<256x128xf32>
    %c0_16 = arith.constant 0 : index
    %c0_17 = arith.constant 0 : index
    %c2 = arith.constant 2 : index
    %c0_18 = arith.constant 0 : index
    %15 = vector.load %arg1[%c0_16, %c0_17, %c2, %c0_18] : memref<1x18x18x4xf32, #tpu.memory_space<vmem>>, vector<1x16x16x4xf32>
    %16 = vector.shape_cast %15 : vector<1x16x16x4xf32> to vector<16x16x4xf32>
    %17 = vector.shape_cast %16 : vector<16x16x4xf32> to vector<256x4xf32>
    %c0_19 = arith.constant 0 : index
    %c2_20 = arith.constant 2 : index
    %c0_21 = arith.constant 0 : index
    %c0_22 = arith.constant 0 : index
    %18 = vector.load %arg2[%c0_19, %c2_20, %c0_21, %c0_22] : memref<3x3x4x128xf32, #tpu.memory_space<vmem>>, vector<1x1x4x128xf32>
    %19 = vector.shape_cast %18 : vector<1x1x4x128xf32> to vector<4x128xf32>
    %cst_23 = arith.constant dense<0.000000e+00> : vector<256x128xf32>
    %20 = tpu.matmul %17, %19, %cst_23 {dimension_numbers = #tpu.dot_dimension_numbers<[1], [0], [0], [1], [0, 0, 1, 1], [], []>} : vector<256x4xf32>, vector<4x128xf32>, vector<256x128xf32> -> vector<256x128xf32>
    %21 = arith.addf %14, %20 : vector<256x128xf32>
    %c0_24 = arith.constant 0 : index
    %c1_25 = arith.constant 1 : index
    %c0_26 = arith.constant 0 : index
    %c0_27 = arith.constant 0 : index
    %22 = vector.load %arg1[%c0_24, %c1_25, %c0_26, %c0_27] : memref<1x18x18x4xf32, #tpu.memory_space<vmem>>, vector<1x16x16x4xf32>
    %23 = vector.shape_cast %22 : vector<1x16x16x4xf32> to vector<16x16x4xf32>
    %24 = vector.shape_cast %23 : vector<16x16x4xf32> to vector<256x4xf32>
    %c1_28 = arith.constant 1 : index
    %c0_29 = arith.constant 0 : index
    %c0_30 = arith.constant 0 : index
    %c0_31 = arith.constant 0 : index
    %25 = vector.load %arg2[%c1_28, %c0_29, %c0_30, %c0_31] : memref<3x3x4x128xf32, #tpu.memory_space<vmem>>, vector<1x1x4x128xf32>
    %26 = vector.shape_cast %25 : vector<1x1x4x128xf32> to vector<4x128xf32>
    %cst_32 = arith.constant dense<0.000000e+00> : vector<256x128xf32>
    %27 = tpu.matmul %24, %26, %cst_32 {dimension_numbers = #tpu.dot_dimension_numbers<[1], [0], [0], [1], [0, 0, 1, 1], [], []>} : vector<256x4xf32>, vector<4x128xf32>, vector<256x128xf32> -> vector<256x128xf32>
    %28 = arith.addf %21, %27 : vector<256x128xf32>
    %c0_33 = arith.constant 0 : index
    %c1_34 = arith.constant 1 : index
    %c1_35 = arith.constant 1 : index
    %c0_36 = arith.constant 0 : index
    %29 = vector.load %arg1[%c0_33, %c1_34, %c1_35, %c0_36] : memref<1x18x18x4xf32, #tpu.memory_space<vmem>>, vector<1x16x16x4xf32>
    %30 = vector.shape_cast %29 : vector<1x16x16x4xf32> to vector<16x16x4xf32>
    %31 = vector.shape_cast %30 : vector<16x16x4xf32> to vector<256x4xf32>
    %c1_37 = arith.constant 1 : index
    %c1_38 = arith.constant 1 : index
    %c0_39 = arith.constant 0 : index
    %c0_40 = arith.constant 0 : index
    %32 = vector.load %arg2[%c1_37, %c1_38, %c0_39, %c0_40] : memref<3x3x4x128xf32, #tpu.memory_space<vmem>>, vector<1x1x4x128xf32>
    %33 = vector.shape_cast %32 : vector<1x1x4x128xf32> to vector<4x128xf32>
    %cst_41 = arith.constant dense<0.000000e+00> : vector<256x128xf32>
    %34 = tpu.matmul %31, %33, %cst_41 {dimension_numbers = #tpu.dot_dimension_numbers<[1], [0], [0], [1], [0, 0, 1, 1], [], []>} : vector<256x4xf32>, vector<4x128xf32>, vector<256x128xf32> -> vector<256x128xf32>
    %35 = arith.addf %28, %34 : vector<256x128xf32>
    %c0_42 = arith.constant 0 : index
    %c1_43 = arith.constant 1 : index
    %c2_44 = arith.constant 2 : index
    %c0_45 = arith.constant 0 : index
    %36 = vector.load %arg1[%c0_42, %c1_43, %c2_44, %c0_45] : memref<1x18x18x4xf32, #tpu.memory_space<vmem>>, vector<1x16x16x4xf32>
    %37 = vector.shape_cast %36 : vector<1x16x16x4xf32> to vector<16x16x4xf32>
    %38 = vector.shape_cast %37 : vector<16x16x4xf32> to vector<256x4xf32>
    %c1_46 = arith.constant 1 : index
    %c2_47 = arith.constant 2 : index
    %c0_48 = arith.constant 0 : index
    %c0_49 = arith.constant 0 : index
    %39 = vector.load %arg2[%c1_46, %c2_47, %c0_48, %c0_49] : memref<3x3x4x128xf32, #tpu.memory_space<vmem>>, vector<1x1x4x128xf32>
    %40 = vector.shape_cast %39 : vector<1x1x4x128xf32> to vector<4x128xf32>
    %cst_50 = arith.constant dense<0.000000e+00> : vector<256x128xf32>
    %41 = tpu.matmul %38, %40, %cst_50 {dimension_numbers = #tpu.dot_dimension_numbers<[1], [0], [0], [1], [0, 0, 1, 1], [], []>} : vector<256x4xf32>, vector<4x128xf32>, vector<256x128xf32> -> vector<256x128xf32>
    %42 = arith.addf %35, %41 : vector<256x128xf32>
    %c0_51 = arith.constant 0 : index
    %c2_52 = arith.constant 2 : index
    %c0_53 = arith.constant 0 : index
    %c0_54 = arith.constant 0 : index
    %43 = vector.load %arg1[%c0_51, %c2_52, %c0_53, %c0_54] : memref<1x18x18x4xf32, #tpu.memory_space<vmem>>, vector<1x16x16x4xf32>
    %44 = vector.shape_cast %43 : vector<1x16x16x4xf32> to vector<16x16x4xf32>
    %45 = vector.shape_cast %44 : vector<16x16x4xf32> to vector<256x4xf32>
    %c2_55 = arith.constant 2 : index
    %c0_56 = arith.constant 0 : index
    %c0_57 = arith.constant 0 : index
    %c0_58 = arith.constant 0 : index
    %46 = vector.load %arg2[%c2_55, %c0_56, %c0_57, %c0_58] : memref<3x3x4x128xf32, #tpu.memory_space<vmem>>, vector<1x1x4x128xf32>
    %47 = vector.shape_cast %46 : vector<1x1x4x128xf32> to vector<4x128xf32>
    %cst_59 = arith.constant dense<0.000000e+00> : vector<256x128xf32>
    %48 = tpu.matmul %45, %47, %cst_59 {dimension_numbers = #tpu.dot_dimension_numbers<[1], [0], [0], [1], [0, 0, 1, 1], [], []>} : vector<256x4xf32>, vector<4x128xf32>, vector<256x128xf32> -> vector<256x128xf32>
    %49 = arith.addf %42, %48 : vector<256x128xf32>
    %c0_60 = arith.constant 0 : index
    %c2_61 = arith.constant 2 : index
    %c1_62 = arith.constant 1 : index
    %c0_63 = arith.constant 0 : index
    %50 = vector.load %arg1[%c0_60, %c2_61, %c1_62, %c0_63] : memref<1x18x18x4xf32, #tpu.memory_space<vmem>>, vector<1x16x16x4xf32>
    %51 = vector.shape_cast %50 : vector<1x16x16x4xf32> to vector<16x16x4xf32>
    %52 = vector.shape_cast %51 : vector<16x16x4xf32> to vector<256x4xf32>
    %c2_64 = arith.constant 2 : index
    %c1_65 = arith.constant 1 : index
    %c0_66 = arith.constant 0 : index
    %c0_67 = arith.constant 0 : index
    %53 = vector.load %arg2[%c2_64, %c1_65, %c0_66, %c0_67] : memref<3x3x4x128xf32, #tpu.memory_space<vmem>>, vector<1x1x4x128xf32>
    %54 = vector.shape_cast %53 : vector<1x1x4x128xf32> to vector<4x128xf32>
    %cst_68 = arith.constant dense<0.000000e+00> : vector<256x128xf32>
    %55 = tpu.matmul %52, %54, %cst_68 {dimension_numbers = #tpu.dot_dimension_numbers<[1], [0], [0], [1], [0, 0, 1, 1], [], []>} : vector<256x4xf32>, vector<4x128xf32>, vector<256x128xf32> -> vector<256x128xf32>
    %56 = arith.addf %49, %55 : vector<256x128xf32>
    %c0_69 = arith.constant 0 : index
    %c2_70 = arith.constant 2 : index
    %c2_71 = arith.constant 2 : index
    %c0_72 = arith.constant 0 : index
    %57 = vector.load %arg1[%c0_69, %c2_70, %c2_71, %c0_72] : memref<1x18x18x4xf32, #tpu.memory_space<vmem>>, vector<1x16x16x4xf32>
    %58 = vector.shape_cast %57 : vector<1x16x16x4xf32> to vector<16x16x4xf32>
    %59 = vector.shape_cast %58 : vector<16x16x4xf32> to vector<256x4xf32>
    %c2_73 = arith.constant 2 : index
    %c2_74 = arith.constant 2 : index
    %c0_75 = arith.constant 0 : index
    %c0_76 = arith.constant 0 : index
    %60 = vector.load %arg2[%c2_73, %c2_74, %c0_75, %c0_76] : memref<3x3x4x128xf32, #tpu.memory_space<vmem>>, vector<1x1x4x128xf32>
    %61 = vector.shape_cast %60 : vector<1x1x4x128xf32> to vector<4x128xf32>
    %cst_77 = arith.constant dense<0.000000e+00> : vector<256x128xf32>
    %62 = tpu.matmul %59, %61, %cst_77 {dimension_numbers = #tpu.dot_dimension_numbers<[1], [0], [0], [1], [0, 0, 1, 1], [], []>} : vector<256x4xf32>, vector<4x128xf32>, vector<256x128xf32> -> vector<256x128xf32>
    %63 = arith.addf %56, %62 : vector<256x128xf32>
    %c0_78 = arith.constant 0 : index
    %c0_79 = arith.constant 0 : index
    %64 = vector.load %arg3[%c0_78, %c0_79] : memref<1x128xf32, #tpu.memory_space<vmem>>, vector<1x128xf32>
    %65 = vector.broadcast %64 : vector<1x128xf32> to vector<256x128xf32>
    %66 = arith.addf %63, %65 : vector<256x128xf32>
    %cst_80 = arith.constant 0.000000e+00 : f32
    %cst_81 = arith.constant 6.000000e+00 : f32
    %67 = vector.broadcast %cst_80 : f32 to vector<256x128xf32>
    %68 = arith.maximumf %67, %66 : vector<256x128xf32>
    %69 = vector.broadcast %cst_81 : f32 to vector<256x128xf32>
    %70 = arith.minimumf %69, %68 : vector<256x128xf32>
    %71 = vector.shape_cast %70 : vector<256x128xf32> to vector<16x16x128xf32>
    %c0_82 = arith.constant 0 : index
    %c0_83 = arith.constant 0 : index
    %c0_84 = arith.constant 0 : index
    %c0_85 = arith.constant 0 : index
    %72 = vector.load %arg4[%c0_82, %c0_83, %c0_84, %c0_85] : memref<1x16x16x128xf32, #tpu.memory_space<vmem>>, vector<1x16x16x128xf32>
    %73 = vector.shape_cast %72 : vector<1x16x16x128xf32> to vector<16x16x128xf32>
    %74 = vector.shape_cast %71 : vector<16x16x128xf32> to vector<1x16x16x128xf32>
    tpu.vector_store %arg4[%c0_82, %c0_83, %c0_84, %c0_85], %74 {strides = array<i32>} : memref<1x16x16x128xf32, #tpu.memory_space<vmem>>, vector<1x16x16x128xf32>,
    return
  }
  func.func @transform_0(%arg0: i32) -> (i32, i32, i32, i32) {
    %c0_i32 = arith.constant 0 : i32
    %c0_i32_0 = arith.constant 0 : i32
    %c0_i32_1 = arith.constant 0 : i32
    %c0_i32_2 = arith.constant 0 : i32
    return %arg0, %c0_i32, %c0_i32_0, %c0_i32_1 : i32, i32, i32, i32
  }
  func.func @transform_1(%arg0: i32) -> (i32, i32, i32, i32) {
    %c0_i32 = arith.constant 0 : i32
    %c0_i32_0 = arith.constant 0 : i32
    %c0_i32_1 = arith.constant 0 : i32
    %c0_i32_2 = arith.constant 0 : i32
    %c0_i32_3 = arith.constant 0 : i32
    return %c0_i32, %c0_i32_0, %c0_i32_1, %c0_i32_2 : i32, i32, i32, i32
  }
  func.func @transform_2(%arg0: i32) -> (i32, i32) {
    %c0_i32 = arith.constant 0 : i32
    %c0_i32_0 = arith.constant 0 : i32
    %c0_i32_1 = arith.constant 0 : i32
    return %c0_i32, %c0_i32_0 : i32, i32
  }
  func.func @transform_3(%arg0: i32) -> (i32, i32, i32, i32) {
    %c0_i32 = arith.constant 0 : i32
    %c0_i32_0 = arith.constant 0 : i32
    %c0_i32_1 = arith.constant 0 : i32
    %c0_i32_2 = arith.constant 0 : i32
    return %arg0, %c0_i32, %c0_i32_0, %c0_i32_1 : i32, i32, i32, i32
  }
}

</mosaic_0001>

<bundles_post_ra>
// kernel: tpu_custom_call.1
= control target key start
LH: loop header
LB: loop body
LE: loop exit
PB: predicated region body
PF: predicated region fallthrough
CT: control target
= control target key end

     0   :  { %8 = vsyncpa [#allocation3], 0  ;;  %s6597_s0 = inlined_call_operand.vmem [shape: f32[2,18,18,4], index: 0, kind: input, shape index: {}]   ;;  %s6598_s1 = inlined_call_operand.vmem [shape: f32[3,3,4,128], index: 1, kind: input, shape index: {}]   ;;  %s6599_s2 = inlined_call_operand.vmem [shape: f32[1,128], index: 2, kind: input, shape index: {}]   ;;  %s6600_s3 = inlined_call_operand.hbm [shape: f32[2,16,16,128], index: 3, kind: output, shape index: {}]  }
   0x1   :  { %10 = vsyncpa [#allocation3 + $0x1], 0  ;;  %s5473_s12 = smov 0   ;;  %s5475_s13 = smov 0  }
   0x2   :  { %s5477_s14 = smov 0   ;;  %s5479_s15 = smov 0  }
   0x3 LB: > { %s5494_s16 = sadd.s32 4294967295, %s5448_s15   ;;  %s3829_s17 = sadd.s32 4294967294, %s5448_s15   ;;  %s5448_s15 = sphi %s5479_s15, %s6715_s15   ;;  %s5444_s14 = sphi %s5477_s14, %s6714_s14   ;;  %s5440_s13 = sphi %s5475_s13, %s6713_s13   ;;  %s5436_s12 = sphi %s5473_s12, %s6712_s12  }
   0x4   : > { %s5498_s18 = sadd.s32 1, %s5448_s15   ;;  %s91_s19 = sadd.s32 1, %s5444_s14 }
   0x5   : > { %s88_s20 = ssub.s32 %s5448_s15, %s5498_s18  ;;  %p101_p0 = scmp.ne.s32.totalorder %s5444_s14, %s5440_s13 }
   0x6   : > { %p89_p1 = scmp.eq.s32.totalorder %s88_s20, 0  ;;  %p102_p2 = scmp.eq.s32.totalorder %s5494_s16, 1 }
   0x7   : > { %p107_p3 = scmp.ne.s32.totalorder %s5440_s13, %s5436_s12  ;;  %p108_p4 = scmp.eq.s32.totalorder %s3829_s17, 1 }
   0x8   : > { %s5509_s21 = scalar_select %p89_p1, %s5444_s14, %s91_s19  }
   0x9   : > { %p5511_p5 = por %p102_p2, %p101_p0  ;;  %p5515_p6 = por %p108_p4, %p107_p3 }
   0xa   : > { %p3832_p7 = scmp.ge.s32.totalorder %s5448_s15, 1  ;;  %p140_p8 = scmp.lt.s32.totalorder %s5448_s15, 3 }
   0xc   : > { %p141_p9 = pnand %p3832_p7, %p140_p8 }
   0xe   : > { %144 = sbr.rel (%p141_p9) target bundleno = 550 (0x226), region = 32 }
  0x15   : > { %v3835_v0 = vld [vmem:[%s6598_s1 + $0x4] sm:$0xf]  ;;  %vm333_vm0 = vcmask 1043456   ;;  %v5527_v1 = vld [vmem:[%s6598_s1 + $0x10] sm:$0xf]  ;;  %p164_p10 = scmp.lt.s32.totalorder %s5494_s16, 1 }
  0x16   : > { %4636 = vmatprep.subr.msk.mxu1 %vm333_vm0, %v3835_v0  ;;  %4836 = vmatprep.subr.msk.mxu0 %vm333_vm0, %v5527_v1  ;;  %v201_v2 = vld [vmem:[%s6598_s1] sm:$0xf]  ;;  %v4100_v3 = vld [vmem:[%s6598_s1 + $0x14] sm:$0xf]  ;;  %vm236_vm1 = vcmask 31744   ;;  %s161_s29 = sand.u32 1, %s5440_s13  }
  0x17   : > { %4637 = vmatpush3.msk.msra.mxu1 %vm333_vm0, %v3835_v0  ;;  %4837 = vmatpush3.msk.msra.mxu0 %vm333_vm0, %v5527_v1  ;;  %s165_s5 = scalar_select %p164_p10, %s5494_s16, 1  ;;  %v4166_v9 = vld [vmem:[%s6598_s1 + $0x18] sm:$0xf]  ;;  %v5567_v10 = vld [vmem:[%s6598_s1 + $0x8] sm:$0xf] }
  0x18   : > { %4686 = vmatprep.subr.msk.mxu1 %vm333_vm0, %v201_v2  ;;  %4886 = vmatprep.subr.msk.mxu0 %vm333_vm0, %v4100_v3  ;;  %v5686_v28 = vld [vmem:[%s6598_s1 + $0x1c] sm:$0xf]  ;;  %v5849_v61 = vld [vmem:[%s6598_s1 + $0xc] sm:$0xf]  ;;  %s4338_s7 = sshll.u32 %s5494_s16, 12  ;;  %s6556_s16 = scalar_lea.sflag [#allocation3], %s161_s29 }
  0x19   : > { %s5344_s6 = smul.u32 432, %s165_s5  ;;  %s3833_s5 = sshll.u32 %s161_s29, 8 }
  0x1a   : > { %s6548_s11 = scalar_lea.hbm %s6600_s3, %s4338_s7  ;;  %s5450_s19 = smov [#allocation2]  }
  0x1b   : > { %s5548_s9 = scalar_lea.vmem %s6597_s0, %s5344_s6  ;;  %s6477_s6 = scalar_lea.vmem [#allocation2], %s3833_s5 }
  0x1c   : > { %v202_v4 = vld [vmem:[%s5548_s9 + $0x1] sm:$0xff]  ;;  %v4002_v5 = vld [vmem:[%s5548_s9 + $0x19] sm:$0xff]  ;;  %v203_v6 = vld [vmem:[%s5548_s9 + $0x9] sm:$0xff]  ;;  %s3767_s8 = sshll.u32 %s6477_s6, 4  ;;  %s5390_s20 = sshll.u32 %s5450_s19, 4  ;;  %s6550_s8 = int_to_ptr.vmem [resolvable:$true] %s3767_s8  ;;  %s5391_s20 = int_to_ptr.vmem [resolvable:$false] %s5390_s20 }
  0x1d   : > { %4638 = vmatprep.mubr.msk.f32.mxu1 %vm236_vm1, %v202_v4  ;;  %4838 = vmatprep.mubr.msk.f32.mxu0 %vm236_vm1, %v4002_v5  ;;  %v4003_v7 = vld [vmem:[%s5548_s9 + $0x21] sm:$0xff]  ;;  %v5557_v8 = vld [vmem:[%s5548_s9 + $0x31] sm:$0xff]  ;;  %v5572_v11 = vld [vmem:[%s5548_s9 + $0x39] sm:$0xff]  ;;  %s5386_s17 = scalar_lea.vmem %s6550_s8, 4096  ;;  %s5392_s24 = scalar_lea.vmem %s5391_s20, 8192 }
  0x1e   : > { %4639 = vmatmul.mubr.msk.f32.vlgmr.msra.gmra.mrb[0].mxu1 %vm236_vm1, %v203_v6  ;;  %4839 = vmatmul.mubr.msk.f32.vlgmr.msra.gmra.mrb[0].mxu0 %vm236_vm1, %v4003_v7  ;;  %v5578_v12 = vld [vmem:[%s5548_s9 + $0x49] sm:$0xff]  ;;  %v5591_v13 = vld [vmem:[%s5548_s9 + $0x51] sm:$0xff]  ;;  %v5594_v14 = vld [vmem:[%s5548_s9 + $0x61] sm:$0xff]  ;;  %p5387_p11 = scmp.ne.s32.totalorder %s6550_s8, %s5386_s17  ;;  %p5393_p0 = scmp.lt.s32.totalorder %s6550_s8, %s5391_s20 }
  0x1f   : > { %4687 = vmatpush3.msk.msra.mxu1 %vm333_vm0, %v201_v2  ;;  %4887 = vmatpush3.msk.msra.mxu0 %vm333_vm0, %v4100_v3  ;;  %v5605_v15 = vld [vmem:[%s5548_s9 + $0x69] sm:$0xff]  ;;  %v5608_v16 = vld [vmem:[%s5548_s9 + $0x79] sm:$0xff]  ;;  %v5619_v17 = vld [vmem:[%s5548_s9 + $0x81] sm:$0xff]  ;;  %p5394_p1 = scmp.lt.s32.totalorder %s5392_s24, %s5386_s17 }
  0x20   : > { %4641 = vmatprep.mubr.msk.f32.mxu1 %vm236_vm1, %v4002_v5  ;;  %4841 = vmatprep.mubr.msk.f32.mxu0 %vm236_vm1, %v5557_v8  ;;  %v5622_v18 = vld [vmem:[%s5548_s9 + $0x91] sm:$0xff]  ;;  %v5633_v19 = vld [vmem:[%s5548_s9 + $0x99] sm:$0xff]  ;;  %v5636_v20 = vld [vmem:[%s5548_s9 + $0xa9] sm:$0xff]  ;;  %p5388_p12 = pnand %p5387_p11, %p5511_p5 }
  0x21   : > { %4936 = vmatprep.subr.msk.mxu0 %vm333_vm0, %v4166_v9  ;;  %4736 = vmatprep.subr.msk.mxu1 %vm333_vm0, %v5567_v10  ;;  %v5647_v21 = vld [vmem:[%s5548_s9 + $0xb1] sm:$0xff]  ;;  %v5650_v22 = vld [vmem:[%s5548_s9 + $0xc1] sm:$0xff]  ;;  %v5661_v23 = vld [vmem:[%s5548_s9 + $0xc9] sm:$0xff]  ;;  %p5395_p2 = por %p5394_p1, %p5393_p0 }
  0x22   : > { %4642 = vmatmul.mubr.msk.f32.gmra.mrb[2].mxu1 %vm236_vm1, %v4003_v7  ;;  %4842 = vmatmul.mubr.msk.f32.gmra.mrb[2].mxu0 %vm236_vm1, %v5572_v11  ;;  %v5664_v24 = vld [vmem:[%s5548_s9 + $0x1a] sm:$0xff]  ;;  %v5675_v25 = vld [vmem:[%s5548_s9 + $0x22] sm:$0xff]  ;;  %v5681_v27 = vld [vmem:[%s5548_s9 + $0x32] sm:$0xff]  ;;  %p5389_p13 = pneg %p5388_p12 }
  0x23   : > { %4644 = vmatprep.mubr.msk.f32.mxu1 %vm236_vm1, %v5557_v8  ;;  %4844 = vmatprep.mubr.msk.f32.mxu0 %vm236_vm1, %v5578_v12  ;;  %v5678_v26 = vld [vmem:[%s5548_s9 + $0xd9] sm:$0xff]  ;;  %v5696_v29 = vld [vmem:[%s5548_s9 + $0xe1] sm:$0xff]  ;;  %v5704_v31 = vld [vmem:[%s5548_s9 + $0xf1] sm:$0xff] }
  0x24   : > { %6648 = vst [vmem:[#allocation5_spill] sm:$0xff] %v5696_v29  ;;  %v5699_v30 = vld [vmem:[%s5548_s9 + $0x3a] sm:$0xff]  ;;  %6649 = vst [vmem:[#allocation6_spill] sm:$0xff] %v5704_v31  ;;  %v5707_v32 = vld [vmem:[%s5548_s9 + $0x4a] sm:$0xff]  ;;  %p5396_p3 = pnand %p5395_p2, %p5389_p13 }
  0x25   : > { %v5720_v33 = vld [vmem:[%s5548_s9 + $0xf9] sm:$0xff]  ;;  %v5726_v35 = vld [vmem:[%s5548_s9 + $0x109] sm:$0xff]  ;;  %v5740_v37 = vld [vmem:[%s5548_s9 + $0x111] sm:$0xff] }
  0x26   : > { %4645 = vmatmul.mubr.msk.f32.gmra.mrb[4].mxu1 %vm236_vm1, %v5572_v11  ;;  %4845 = vmatmul.mubr.msk.f32.gmra.mrb[4].mxu0 %vm236_vm1, %v5591_v13  ;;  %6650 = vst [vmem:[#allocation7_spill] sm:$0xff] %v5720_v33  ;;  %v5723_v34 = vld [vmem:[%s5548_s9 + $0x52] sm:$0xff]  ;;  %6651 = vst [vmem:[#allocation8_spill] sm:$0xff] %v5726_v35  ;;  %v5729_v36 = vld [vmem:[%s5548_s9 + $0x62] sm:$0xff] }
  0x27   : > { %4647 = vmatprep.mubr.msk.f32.mxu1 %vm236_vm1, %v5578_v12  ;;  %4847 = vmatprep.mubr.msk.f32.mxu0 %vm236_vm1, %v5594_v14  ;;  %6652 = vst [vmem:[#allocation9_spill] sm:$0xff] %v5740_v37  ;;  %v5743_v38 = vld [vmem:[%s5548_s9 + $0x6a] sm:$0xff]  ;;  %v5746_v39 = vld [vmem:[%s5548_s9 + $0x121] sm:$0xff]  ;;  %v5766_v43 = vld [vmem:[%s5548_s9 + $0x139] sm:$0xff] }
  0x28   : > { %6653 = vst [vmem:[#allocation10_spill] sm:$0xff] %v5746_v39  ;;  %v5749_v40 = vld [vmem:[%s5548_s9 + $0x7a] sm:$0xff]  ;;  %v5760_v41 = vld [vmem:[%s5548_s9 + $0x129] sm:$0xff]  ;;  %6655 = vst [vmem:[#allocation12_spill] sm:$0xff] %v5766_v43 }
  0x29   : > { %6654 = vst [vmem:[#allocation11_spill] sm:$0xff] %v5760_v41  ;;  %v5763_v42 = vld [vmem:[%s5548_s9 + $0x82] sm:$0xff]  ;;  %v5769_v44 = vld [vmem:[%s5548_s9 + $0x92] sm:$0xff]  ;;  %v5783_v46 = vld [vmem:[%s5548_s9 + $0x9a] sm:$0xff] }
  0x2a   : > { %4648 = vmatmul.mubr.msk.f32.gmra.mrb[6].mxu1 %vm236_vm1, %v5591_v13  ;;  %4848 = vmatmul.mubr.msk.f32.gmra.mrb[6].mxu0 %vm236_vm1, %v5605_v15  ;;  %v5780_v45 = vld [vmem:[%s5548_s9 + $0x141] sm:$0xff]  ;;  %v5786_v47 = vld [vmem:[%s5548_s9 + $0x151] sm:$0xff]  ;;  %v5800_v49 = vld [vmem:[%s5548_s9 + $0x159] sm:$0xff] }
  0x2b   : > { %4650 = vmatprep.mubr.msk.f32.mxu1 %vm236_vm1, %v5594_v14  ;;  %4850 = vmatprep.mubr.msk.f32.mxu0 %vm236_vm1, %v5608_v16  ;;  %6656 = vst [vmem:[#allocation13_spill] sm:$0xff] %v5780_v45  ;;  %6657 = vst [vmem:[#allocation14_spill] sm:$0xff] %v5786_v47  ;;  %v5789_v48 = vld [vmem:[%s5548_s9 + $0xaa] sm:$0xff]  ;;  %v5803_v50 = vld [vmem:[%s5548_s9 + $0xb2] sm:$0xff] }
  0x2c   : > { %6658 = vst [vmem:[#allocation15_spill] sm:$0xff] %v5800_v49  ;;  %v5806_v51 = vld [vmem:[%s5548_s9 + $0x169] sm:$0xff]  ;;  %v5820_v53 = vld [vmem:[%s5548_s9 + $0x171] sm:$0xff]  ;;  %v169_v55 = vld [vmem:[%s5548_s9] sm:$0xff] }
  0x2d   : > { %6659 = vst [vmem:[#allocation16_spill] sm:$0xff] %v5806_v51  ;;  %v5809_v52 = vld [vmem:[%s5548_s9 + $0xc2] sm:$0xff]  ;;  %6660 = vst [vmem:[#allocation17_spill] sm:$0xff] %v5820_v53  ;;  %v5823_v54 = vld [vmem:[%s5548_s9 + $0xca] sm:$0xff] }
  0x2e   : > { %4651 = vmatmul.mubr.msk.f32.gmra.mrb[8].mxu1 %vm236_vm1, %v5605_v15  ;;  %4851 = vmatmul.mubr.msk.f32.gmra.mrb[8].mxu0 %vm236_vm1, %v5619_v17  ;;  %v5827_v56 = vld [vmem:[%s5548_s9 + $0xda] sm:$0xff]  ;;  %v170_v57 = vld [vmem:[%s5548_s9 + $0x8] sm:$0xff]  ;;  %v5844_v60 = vld [vmem:[%s5548_s9 + $0xf2] sm:$0xff] }
  0x2f   : > { %4653 = vmatprep.mubr.msk.f32.mxu1 %vm236_vm1, %v5608_v16  ;;  %4853 = vmatprep.mubr.msk.f32.mxu0 %vm236_vm1, %v5622_v18  ;;  %v5838_v58 = vld [vmem:[%s5548_s9 + $0xe2] sm:$0xff]  ;;  %v5841_v59 = vld [vmem:[%s5548_s9 + $0x18] sm:$0xff]  ;;  %v5867_v0 = vld [vmem:[%s5548_s9 + $0x30] sm:$0xff] }
  0x30   : > { %6661 = vst [vmem:[#allocation18_spill] sm:$0xff] %v5841_v59  ;;  %v5859_v62 = vld [vmem:[%s5548_s9 + $0x20] sm:$0xff]  ;;  %6663 = vst [vmem:[#allocation20_spill] sm:$0xff] %v5867_v0  ;;  %v5870_v2 = vld [vmem:[%s5548_s9 + $0x10a] sm:$0xff] }
  0x31   : > { %6662 = vst [vmem:[#allocation19_spill] sm:$0xff] %v5859_v62  ;;  %v5862_v63 = vld [vmem:[%s5548_s9 + $0xfa] sm:$0xff]  ;;  %v5886_v4 = vld [vmem:[%s5548_s9 + $0x112] sm:$0xff]  ;;  %v5889_v5 = vld [vmem:[%s5548_s9 + $0x48] sm:$0xff] }
  0x32   : > { %4654 = vmatmul.mubr.msk.f32.gmra.mrb[10].mxu1 %vm236_vm1, %v5619_v17  ;;  %4854 = vmatmul.mubr.msk.f32.gmra.mrb[10].mxu0 %vm236_vm1, %v5633_v19  ;;  %v5883_v3 = vld [vmem:[%s5548_s9 + $0x38] sm:$0xff]  ;;  %6665 = vst [vmem:[#allocation22_spill] sm:$0xff] %v5889_v5  ;;  %v5892_v6 = vld [vmem:[%s5548_s9 + $0x122] sm:$0xff]  ;;  %v5903_v7 = vld [vmem:[%s5548_s9 + $0x50] sm:$0xff] }
  0x33   : > { %4656 = vmatprep.mubr.msk.f32.mxu1 %vm236_vm1, %v5622_v18  ;;  %4856 = vmatprep.mubr.msk.f32.mxu0 %vm236_vm1, %v5636_v20  ;;  %6664 = vst [vmem:[#allocation21_spill] sm:$0xff] %v5883_v3  ;;  %6666 = vst [vmem:[#allocation23_spill] sm:$0xff] %v5903_v7 }
  0x36   : > { %4657 = vmatmul.mubr.msk.f32.gmra.mrb[12].mxu1 %vm236_vm1, %v5633_v19  ;;  %4857 = vmatmul.mubr.msk.f32.gmra.mrb[12].mxu0 %vm236_vm1, %v5647_v21 }
  0x37   : > { %4659 = vmatprep.mubr.msk.f32.mxu1 %vm236_vm1, %v5636_v20  ;;  %4859 = vmatprep.mubr.msk.f32.mxu0 %vm236_vm1, %v5650_v22 }
  0x3a   : > { %4660 = vmatmul.mubr.msk.f32.gmra.mrb[14].mxu1 %vm236_vm1, %v5647_v21  ;;  %4860 = vmatmul.mubr.msk.f32.gmra.mrb[14].mxu0 %vm236_vm1, %v5661_v23 }
  0x3b   : > { %4662 = vmatprep.mubr.msk.f32.mxu1 %vm236_vm1, %v5650_v22  ;;  %4888 = vmatprep.mubr.msk.f32.mxu0 %vm236_vm1, %v5664_v24 }
  0x3e   : > { %4663 = vmatmul.mubr.msk.f32.gmra.mrb[16].mxu1 %vm236_vm1, %v5661_v23  ;;  %4889 = vmatmul.mubr.msk.f32.vlgmr.msra.gmra.mrb[0].mxu0 %vm236_vm1, %v5675_v25 }
  0x3f   : > { %4937 = vmatpush3.msk.msra.mxu0 %vm333_vm0, %v4166_v9  ;;  %4665 = vmatprep.mubr.msk.f32.mxu1 %vm236_vm1, %v5678_v26  ;;  %v5906_v9 = vld [vmem:[%s5548_s9 + $0x12a] sm:$0xff] }
  0x40   : > { %4891 = vmatprep.mubr.msk.f32.mxu0 %vm236_vm1, %v5681_v27  ;;  %4986 = vmatprep.subr.msk.mxu0 %vm333_vm0, %v5686_v28 }
  0x42   : > { %4666 = vmatmul.mubr.msk.f32.gmra.mrb[18].mxu1 %vm236_vm1, %v5696_v29  ;;  %4892 = vmatmul.mubr.msk.f32.gmra.mrb[2].mxu0 %vm236_vm1, %v5699_v30  ;;  %v6003_v29 = vld [vmem:[%s5548_s9 + $0xd8] sm:$0xff] }
  0x43   : > { %4668 = vmatprep.mubr.msk.f32.mxu1 %vm236_vm1, %v5704_v31  ;;  %4894 = vmatprep.mubr.msk.f32.mxu0 %vm236_vm1, %v5707_v32  ;;  %v5986_v31 = vld [vmem:[%s5548_s9 + $0x18a] sm:$0xff] }
  0x44   : > { %6677 = vst [vmem:[#allocation34_spill] sm:$0xff] %v5986_v31 }
  0x46   : > { %4669 = vmatmul.mubr.msk.f32.gmra.mrb[20].mxu1 %vm236_vm1, %v5720_v33  ;;  %4895 = vmatmul.mubr.msk.f32.gmra.mrb[4].mxu0 %vm236_vm1, %v5723_v34  ;;  %v5972_v33 = vld [vmem:[%s5548_s9 + $0x182] sm:$0xff] }
  0x47   : > { %4671 = vmatprep.mubr.msk.f32.mxu1 %vm236_vm1, %v5726_v35  ;;  %4897 = vmatprep.mubr.msk.f32.mxu0 %vm236_vm1, %v5729_v36  ;;  %v5969_v35 = vld [vmem:[%s5548_s9 + $0xa8] sm:$0xff]  ;;  %6675 = vst [vmem:[#allocation32_spill] sm:$0xff] %v5972_v33 }
  0x48   : > { %6674 = vst [vmem:[#allocation31_spill] sm:$0xff] %v5969_v35 }
  0x4a   : > { %4672 = vmatmul.mubr.msk.f32.gmra.mrb[22].mxu1 %vm236_vm1, %v5740_v37  ;;  %4898 = vmatmul.mubr.msk.f32.gmra.mrb[6].mxu0 %vm236_vm1, %v5743_v38  ;;  %v5966_v37 = vld [vmem:[%s5548_s9 + $0x172] sm:$0xff] }
  0x4b   : > { %4674 = vmatprep.mubr.msk.f32.mxu1 %vm236_vm1, %v5746_v39  ;;  %4900 = vmatprep.mubr.msk.f32.mxu0 %vm236_vm1, %v5749_v40  ;;  %v5963_v39 = vld [vmem:[%s5548_s9 + $0x98] sm:$0xff]  ;;  %6673 = vst [vmem:[#allocation30_spill] sm:$0xff] %v5966_v37 }
  0x4c   : > { %6672 = vst [vmem:[#allocation29_spill] sm:$0xff] %v5963_v39 }
  0x4e   : > { %4675 = vmatmul.mubr.msk.f32.gmra.mrb[24].mxu1 %vm236_vm1, %v5760_v41  ;;  %4901 = vmatmul.mubr.msk.f32.gmra.mrb[8].mxu0 %vm236_vm1, %v5763_v42  ;;  %v5952_v41 = vld [vmem:[%s5548_s9 + $0x16a] sm:$0xff] }
  0x4f   : > { %4677 = vmatprep.mubr.msk.f32.mxu1 %vm236_vm1, %v5766_v43  ;;  %4903 = vmatprep.mubr.msk.f32.mxu0 %vm236_vm1, %v5769_v44  ;;  %v5949_v43 = vld [vmem:[%s5548_s9 + $0x90] sm:$0xff] }
  0x50   : > { %6671 = vst [vmem:[#allocation28_spill] sm:$0xff] %v5949_v43 }
  0x52   : > { %4678 = vmatmul.mubr.msk.f32.gmra.mrb[26].mxu1 %vm236_vm1, %v5780_v45  ;;  %4904 = vmatmul.mubr.msk.f32.gmra.mrb[10].mxu0 %vm236_vm1, %v5783_v46  ;;  %v5946_v45 = vld [vmem:[%s5548_s9 + $0x15a] sm:$0xff] }
  0x53   : > { %4680 = vmatprep.mubr.msk.f32.mxu1 %vm236_vm1, %v5786_v47  ;;  %4906 = vmatprep.mubr.msk.f32.mxu0 %vm236_vm1, %v5789_v48  ;;  %v5943_v47 = vld [vmem:[%s5548_s9 + $0x80] sm:$0xff] }
  0x54   : > { %6670 = vst [vmem:[#allocation27_spill] sm:$0xff] %v5943_v47 }
  0x56   : > { %4681 = vmatmul.mubr.msk.f32.gmra.mrb[28].mxu1 %vm236_vm1, %v5800_v49  ;;  %4907 = vmatmul.mubr.msk.f32.gmra.mrb[12].mxu0 %vm236_vm1, %v5803_v50  ;;  %v5932_v49 = vld [vmem:[%s5548_s9 + $0x152] sm:$0xff] }
  0x57   : > { %4683 = vmatprep.mubr.msk.f32.mxu1 %vm236_vm1, %v5806_v51  ;;  %4909 = vmatprep.mubr.msk.f32.mxu0 %vm236_vm1, %v5809_v52  ;;  %v5929_v51 = vld [vmem:[%s5548_s9 + $0x78] sm:$0xff] }
  0x58   : > { %6669 = vst [vmem:[#allocation26_spill] sm:$0xff] %v5929_v51 }
  0x5a   : > { %4684 = vmatmul.mubr.msk.f32.gmra.mrb[30].mxu1 %vm236_vm1, %v5820_v53  ;;  %4910 = vmatmul.mubr.msk.f32.gmra.mrb[14].mxu0 %vm236_vm1, %v5823_v54  ;;  %v5926_v53 = vld [vmem:[%s5548_s9 + $0x142] sm:$0xff] }
  0x5b   : > { %4688 = vmatprep.mubr.msk.f32.mxu1 %vm236_vm1, %v169_v55  ;;  %4912 = vmatprep.mubr.msk.f32.mxu0 %vm236_vm1, %v5827_v56  ;;  %v5912_v55 = vld [vmem:[%s5548_s9 + $0x13a] sm:$0xff] }
  0x5e   : > { %4689 = vmatmul.mubr.msk.f32.vlgmr.msra.gmra.mrb[0].mxu1 %vm236_vm1, %v170_v57  ;;  %4913 = vmatmul.mubr.msk.f32.gmra.mrb[16].mxu0 %vm236_vm1, %v5838_v58  ;;  %v5923_v57 = vld [vmem:[%s5548_s9 + $0x68] sm:$0xff] }
  0x5f   : > { %4737 = vmatpush3.msk.msra.mxu1 %vm333_vm0, %v5567_v10  ;;  %4691 = vmatprep.mubr.msk.f32.mxu1 %vm236_vm1, %v5841_v59  ;;  %v5909_v10 = vld [vmem:[%s5548_s9 + $0x60] sm:$0xff]  ;;  %6668 = vst [vmem:[#allocation25_spill] sm:$0xff] %v5923_v57 }
  0x60   : > { %4915 = vmatprep.mubr.msk.f32.mxu0 %vm236_vm1, %v5844_v60  ;;  %4786 = vmatprep.subr.msk.mxu1 %vm333_vm0, %v5849_v61  ;;  %6667 = vst [vmem:[#allocation24_spill] sm:$0xff] %v5909_v10  ;;  %v5989_v59 = vld [vmem:[%s5548_s9 + $0xc0] sm:$0xff] }
  0x62   : > { %4692 = vmatmul.mubr.msk.f32.gmra.mrb[2].mxu1 %vm236_vm1, %v5859_v62  ;;  %4916 = vmatmul.mubr.msk.f32.gmra.mrb[18].mxu0 %vm236_vm1, %v5862_v63  ;;  %v5983_v62 = vld [vmem:[%s5548_s9 + $0xb0] sm:$0xff] }
  0x63   : > { %4694 = vmatprep.mubr.msk.f32.mxu1 %vm236_vm1, %v5867_v0  ;;  %4918 = vmatprep.mubr.msk.f32.mxu0 %vm236_vm1, %v5870_v2  ;;  %6676 = vst [vmem:[#allocation33_spill] sm:$0xff] %v5983_v62 }
  0x66   : > { %4695 = vmatmul.mubr.msk.f32.gmra.mrb[4].mxu1 %vm236_vm1, %v5883_v3  ;;  %4919 = vmatmul.mubr.msk.f32.gmra.mrb[20].mxu0 %vm236_vm1, %v5886_v4 }
  0x67   : > { %4697 = vmatprep.mubr.msk.f32.mxu1 %vm236_vm1, %v5889_v5  ;;  %4921 = vmatprep.mubr.msk.f32.mxu0 %vm236_vm1, %v5892_v6 }
  0x6a   : > { %4698 = vmatmul.mubr.msk.f32.gmra.mrb[6].mxu1 %vm236_vm1, %v5903_v7  ;;  %4922 = vmatmul.mubr.msk.f32.gmra.mrb[22].mxu0 %vm236_vm1, %v5906_v9 }
  0x6b   : > { %4700 = vmatprep.mubr.msk.f32.mxu1 %vm236_vm1, %v5909_v10  ;;  %4924 = vmatprep.mubr.msk.f32.mxu0 %vm236_vm1, %v5912_v55 }
  0x6e   : > { %4701 = vmatmul.mubr.msk.f32.gmra.mrb[8].mxu1 %vm236_vm1, %v5923_v57  ;;  %4925 = vmatmul.mubr.msk.f32.gmra.mrb[24].mxu0 %vm236_vm1, %v5926_v53 }
  0x6f   : > { %4703 = vmatprep.mubr.msk.f32.mxu1 %vm236_vm1, %v5929_v51  ;;  %4927 = vmatprep.mubr.msk.f32.mxu0 %vm236_vm1, %v5932_v49 }
  0x72   : > { %4704 = vmatmul.mubr.msk.f32.gmra.mrb[10].mxu1 %vm236_vm1, %v5943_v47  ;;  %4928 = vmatmul.mubr.msk.f32.gmra.mrb[26].mxu0 %vm236_vm1, %v5946_v45 }
  0x73   : > { %4706 = vmatprep.mubr.msk.f32.mxu1 %vm236_vm1, %v5949_v43  ;;  %4930 = vmatprep.mubr.msk.f32.mxu0 %vm236_vm1, %v5952_v41 }
  0x76   : > { %4707 = vmatmul.mubr.msk.f32.gmra.mrb[12].mxu1 %vm236_vm1, %v5963_v39  ;;  %4931 = vmatmul.mubr.msk.f32.gmra.mrb[28].mxu0 %vm236_vm1, %v5966_v37  ;;  %v6008_v37 = vld [vmem:[%s6598_s1 + $0x20] sm:$0xf] }
  0x77   : > { %4709 = vmatprep.mubr.msk.f32.mxu1 %vm236_vm1, %v5969_v35  ;;  %4933 = vmatprep.mubr.msk.f32.mxu0 %vm236_vm1, %v5972_v33  ;;  %v6000_v33 = vld [vmem:[%s5548_s9 + $0xc8] sm:$0xff] }
  0x78   : > { %6678 = vst [vmem:[#allocation35_spill] sm:$0xff] %v6000_v33 }
  0x7a   : > { %4710 = vmatmul.mubr.msk.f32.gmra.mrb[14].mxu1 %vm236_vm1, %v5983_v62  ;;  %4934 = vmatmul.mubr.msk.f32.gmra.mrb[30].mxu0 %vm236_vm1, %v5986_v31  ;;  %v6019_v31 = vld [vmem:[%s5548_s9 + $0xe0] sm:$0xff] }
  0x7b   : > { %4712 = vmatprep.mubr.msk.f32.mxu1 %vm236_vm1, %v5989_v59  ;;  %4938 = vmatprep.mubr.msk.f32.mxu0 %vm236_vm1, %v5867_v0  ;;  %v6024_v0 = vld [vmem:[%s5548_s9 + $0xf0] sm:$0xff] }
  0x7e   : > { %4713 = vmatmul.mubr.msk.f32.gmra.mrb[16].mxu1 %vm236_vm1, %v6000_v33  ;;  %4939 = vmatmul.mubr.msk.f32.vlgmr.msra.gmra.mrb[0].mxu0 %vm236_vm1, %v5883_v3  ;;  %v886_v3 = vld [vmem:[%s5548_s9 + $0x2] sm:$0xff] }
  0x7f   : > { %4987 = vmatpush3.msk.msra.mxu0 %vm333_vm0, %v5686_v28  ;;  %4715 = vmatprep.mubr.msk.f32.mxu1 %vm236_vm1, %v6003_v29  ;;  %v6037_v28 = vld [vmem:[%s5548_s9 + $0xf8] sm:$0xff] }
  0x80   : > { %4941 = vmatprep.mubr.msk.f32.mxu0 %vm236_vm1, %v5889_v5  ;;  %5036 = vmatprep.subr.msk.mxu0 %vm333_vm0, %v6008_v37  ;;  %v6040_v5 = vld [vmem:[%s5548_s9 + $0x108] sm:$0xff] }
  0x82   : > { %4716 = vmatmul.mubr.msk.f32.gmra.mrb[18].mxu1 %vm236_vm1, %v6019_v31  ;;  %4942 = vmatmul.mubr.msk.f32.gmra.mrb[2].mxu0 %vm236_vm1, %v5903_v7  ;;  %v6051_v7 = vld [vmem:[%s5548_s9 + $0x110] sm:$0xff] }
  0x83   : > { %4718 = vmatprep.mubr.msk.f32.mxu1 %vm236_vm1, %v6024_v0  ;;  %4944 = vmatprep.mubr.msk.f32.mxu0 %vm236_vm1, %v5909_v10  ;;  %v6054_v10 = vld [vmem:[%s5548_s9 + $0x120] sm:$0xff] }
  0x86   : > { %4719 = vmatmul.mubr.msk.f32.gmra.mrb[20].mxu1 %vm236_vm1, %v6037_v28  ;;  %4945 = vmatmul.mubr.msk.f32.gmra.mrb[4].mxu0 %vm236_vm1, %v5923_v57  ;;  %v6065_v57 = vld [vmem:[%s5548_s9 + $0x128] sm:$0xff] }
  0x87   : > { %4721 = vmatprep.mubr.msk.f32.mxu1 %vm236_vm1, %v6040_v5  ;;  %4947 = vmatprep.mubr.msk.f32.mxu0 %vm236_vm1, %v5929_v51  ;;  %v6068_v51 = vld [vmem:[%s5548_s9 + $0x138] sm:$0xff] }
  0x8a   : > { %4722 = vmatmul.mubr.msk.f32.gmra.mrb[22].mxu1 %vm236_vm1, %v6051_v7  ;;  %4948 = vmatmul.mubr.msk.f32.gmra.mrb[6].mxu0 %vm236_vm1, %v5943_v47  ;;  %v6079_v47 = vld [vmem:[%s5548_s9 + $0x140] sm:$0xff] }
  0x8b   : > { %4724 = vmatprep.mubr.msk.f32.mxu1 %vm236_vm1, %v6054_v10  ;;  %4950 = vmatprep.mubr.msk.f32.mxu0 %vm236_vm1, %v5949_v43  ;;  %v6082_v43 = vld [vmem:[%s5548_s9 + $0x150] sm:$0xff] }
  0x8e   : > { %4725 = vmatmul.mubr.msk.f32.gmra.mrb[24].mxu1 %vm236_vm1, %v6065_v57  ;;  %4951 = vmatmul.mubr.msk.f32.gmra.mrb[8].mxu0 %vm236_vm1, %v5963_v39  ;;  %v6093_v39 = vld [vmem:[%s5548_s9 + $0x158] sm:$0xff] }
  0x8f   : > { %4727 = vmatprep.mubr.msk.f32.mxu1 %vm236_vm1, %v6068_v51  ;;  %4953 = vmatprep.mubr.msk.f32.mxu0 %vm236_vm1, %v5969_v35  ;;  %v6096_v35 = vld [vmem:[%s5548_s9 + $0x168] sm:$0xff] }
  0x92   : > { %4728 = vmatmul.mubr.msk.f32.gmra.mrb[26].mxu1 %vm236_vm1, %v6079_v47  ;;  %4954 = vmatmul.mubr.msk.f32.gmra.mrb[10].mxu0 %vm236_vm1, %v5983_v62  ;;  %v6107_v62 = vld [vmem:[%s5548_s9 + $0x170] sm:$0xff] }
  0x93   : > { %4730 = vmatprep.mubr.msk.f32.mxu1 %vm236_vm1, %v6082_v43  ;;  %4956 = vmatprep.mubr.msk.f32.mxu0 %vm236_vm1, %v5989_v59 }
  0x96   : > { %4731 = vmatmul.mubr.msk.f32.gmra.mrb[28].mxu1 %vm236_vm1, %v6093_v39  ;;  %4957 = vmatmul.mubr.msk.f32.gmra.mrb[12].mxu0 %vm236_vm1, %v6000_v33  ;;  %v887_v33 = vld [vmem:[%s5548_s9 + $0xa] sm:$0xff] }
  0x97   : > { %4733 = vmatprep.mubr.msk.f32.mxu1 %vm236_vm1, %v6096_v35  ;;  %4959 = vmatprep.mubr.msk.f32.mxu0 %vm236_vm1, %v6003_v29 }
  0x9a   : > { %4734 = vmatmul.mubr.msk.f32.gmra.mrb[30].mxu1 %vm236_vm1, %v6107_v62  ;;  %4960 = vmatmul.mubr.msk.f32.gmra.mrb[14].mxu0 %vm236_vm1, %v6019_v31 }
  0x9b   : > { %4738 = vmatprep.mubr.msk.f32.mxu1 %vm236_vm1, %v886_v3  ;;  %4962 = vmatprep.mubr.msk.f32.mxu0 %vm236_vm1, %v6024_v0  ;;  %v6695_v3 = vld [vmem:[#allocation25_spill] sm:$0xff] }
  0x9e   : > { %4739 = vmatmul.mubr.msk.f32.vlgmr.msra.gmra.mrb[0].mxu1 %vm236_vm1, %v887_v33  ;;  %4963 = vmatmul.mubr.msk.f32.gmra.mrb[16].mxu0 %vm236_vm1, %v6037_v28  ;;  %v4164_v33 = vld [vmem:[%s5548_s9 + $0x198] sm:$0xff] }
  0x9f   : > { %4787 = vmatpush3.msk.msra.mxu1 %vm333_vm0, %v5849_v61  ;;  %4741 = vmatprep.mubr.msk.f32.mxu1 %vm236_vm1, %v5664_v24  ;;  %v6162_v24 = vld [vmem:[%s5548_s9 + $0x180] sm:$0xff] }
  0xa0   : > { %4965 = vmatprep.mubr.msk.f32.mxu0 %vm236_vm1, %v6040_v5  ;;  %5086 = vmatprep.subr.msk.mxu1 %vm333_vm0, %v5527_v1  ;;  %v4165_v61 = vld [vmem:[%s5548_s9 + $0x1a0] sm:$0xff] }
  0xa2   : > { %4742 = vmatmul.mubr.msk.f32.gmra.mrb[2].mxu1 %vm236_vm1, %v5675_v25  ;;  %4966 = vmatmul.mubr.msk.f32.gmra.mrb[18].mxu0 %vm236_vm1, %v6051_v7  ;;  %v6173_v25 = vld [vmem:[%s5548_s9 + $0x188] sm:$0xff] }
  0xa3   : > { %4744 = vmatprep.mubr.msk.f32.mxu1 %vm236_vm1, %v5681_v27  ;;  %4968 = vmatprep.mubr.msk.f32.mxu0 %vm236_vm1, %v6054_v10 }
  0xa6   : > { %4745 = vmatmul.mubr.msk.f32.gmra.mrb[4].mxu1 %vm236_vm1, %v5699_v30  ;;  %4969 = vmatmul.mubr.msk.f32.gmra.mrb[20].mxu0 %vm236_vm1, %v6065_v57 }
  0xa7   : > { %4747 = vmatprep.mubr.msk.f32.mxu1 %vm236_vm1, %v5707_v32  ;;  %4971 = vmatprep.mubr.msk.f32.mxu0 %vm236_vm1, %v6068_v51 }
  0xaa   : > { %4748 = vmatmul.mubr.msk.f32.gmra.mrb[6].mxu1 %vm236_vm1, %v5723_v34  ;;  %4972 = vmatmul.mubr.msk.f32.gmra.mrb[22].mxu0 %vm236_vm1, %v6079_v47 }
  0xab   : > { %4750 = vmatprep.mubr.msk.f32.mxu1 %vm236_vm1, %v5729_v36  ;;  %4974 = vmatprep.mubr.msk.f32.mxu0 %vm236_vm1, %v6082_v43 }
  0xae   : > { %4751 = vmatmul.mubr.msk.f32.gmra.mrb[8].mxu1 %vm236_vm1, %v5743_v38  ;;  %4975 = vmatmul.mubr.msk.f32.gmra.mrb[24].mxu0 %vm236_vm1, %v6093_v39 }
  0xaf   : > { %4753 = vmatprep.mubr.msk.f32.mxu1 %vm236_vm1, %v5749_v40  ;;  %4977 = vmatprep.mubr.msk.f32.mxu0 %vm236_vm1, %v6096_v35 }
  0xb2   : > { %4754 = vmatmul.mubr.msk.f32.gmra.mrb[10].mxu1 %vm236_vm1, %v5763_v42  ;;  %4978 = vmatmul.mubr.msk.f32.gmra.mrb[26].mxu0 %vm236_vm1, %v6107_v62 }
  0xb3   : > { %4756 = vmatprep.mubr.msk.f32.mxu1 %vm236_vm1, %v5769_v44  ;;  %4980 = vmatprep.mubr.msk.f32.mxu0 %vm236_vm1, %v6162_v24 }
  0xb6   : > { %4757 = vmatmul.mubr.msk.f32.gmra.mrb[12].mxu1 %vm236_vm1, %v5783_v46  ;;  %4981 = vmatmul.mubr.msk.f32.gmra.mrb[28].mxu0 %vm236_vm1, %v6173_v25 }
  0xb7   : > { %4759 = vmatprep.mubr.msk.f32.mxu1 %vm236_vm1, %v5789_v48  ;;  %4983 = vmatprep.mubr.msk.f32.mxu0 %vm236_vm1, %v4164_v33  ;;  %v6696_v33 = vld [vmem:[#allocation13_spill] sm:$0xff] }
  0xba   : > { %4760 = vmatmul.mubr.msk.f32.gmra.mrb[14].mxu1 %vm236_vm1, %v5803_v50  ;;  %4984 = vmatmul.mubr.msk.f32.gmra.mrb[30].mxu0 %vm236_vm1, %v4165_v61  ;;  %v6697_v61 = vld [vmem:[#allocation26_spill] sm:$0xff] }
  0xbb   : > { %4762 = vmatprep.mubr.msk.f32.mxu1 %vm236_vm1, %v5809_v52  ;;  %4988 = vmatprep.mubr.msk.f32.mxu0 %vm236_vm1, %v5557_v8  ;;  %v6679_v8 = vld [vmem:[#allocation30_spill] sm:$0xff] }
  0xbe   : > { %4763 = vmatmul.mubr.msk.f32.gmra.mrb[16].mxu1 %vm236_vm1, %v5823_v54  ;;  %4989 = vmatmul.mubr.msk.f32.vlgmr.msra.gmra.mrb[0].mxu0 %vm236_vm1, %v5572_v11  ;;  %v6680_v11 = vld [vmem:[#allocation5_spill] sm:$0xff] }
  0xbf   : > { %5037 = vmatpush3.msk.msra.mxu0 %vm333_vm0, %v6008_v37  ;;  %4765 = vmatprep.mubr.msk.f32.mxu1 %vm236_vm1, %v5827_v56  ;;  %v6694_v37 = vld [vmem:[#allocation12_spill] sm:$0xff] }
  0xc0   : > { %4991 = vmatprep.mubr.msk.f32.mxu0 %vm236_vm1, %v5578_v12  ;;  %v6681_v12 = vld [vmem:[#allocation18_spill] sm:$0xff] }
  0xc2   : > { %4766 = vmatmul.mubr.msk.f32.gmra.mrb[18].mxu1 %vm236_vm1, %v5838_v58  ;;  %4992 = vmatmul.mubr.msk.f32.gmra.mrb[2].mxu0 %vm236_vm1, %v5591_v13  ;;  %v6682_v13 = vld [vmem:[#allocation6_spill] sm:$0xff] }
  0xc3   : > { %4768 = vmatprep.mubr.msk.f32.mxu1 %vm236_vm1, %v5844_v60  ;;  %4994 = vmatprep.mubr.msk.f32.mxu0 %vm236_vm1, %v5594_v14  ;;  %v6683_v14 = vld [vmem:[#allocation19_spill] sm:$0xff] }
  0xc6   : > { %4769 = vmatmul.mubr.msk.f32.gmra.mrb[20].mxu1 %vm236_vm1, %v5862_v63  ;;  %4995 = vmatmul.mubr.msk.f32.gmra.mrb[4].mxu0 %vm236_vm1, %v5605_v15  ;;  %v6684_v15 = vld [vmem:[#allocation7_spill] sm:$0xff] }
  0xc7   : > { %4771 = vmatprep.mubr.msk.f32.mxu1 %vm236_vm1, %v5870_v2  ;;  %4997 = vmatprep.mubr.msk.f32.mxu0 %vm236_vm1, %v5608_v16  ;;  %v6685_v16 = vld [vmem:[#allocation20_spill] sm:$0xff] }
  0xca   : > { %4772 = vmatmul.mubr.msk.f32.gmra.mrb[22].mxu1 %vm236_vm1, %v5886_v4  ;;  %4998 = vmatmul.mubr.msk.f32.gmra.mrb[6].mxu0 %vm236_vm1, %v5619_v17  ;;  %v6686_v17 = vld [vmem:[#allocation8_spill] sm:$0xff] }
  0xcb   : > { %4774 = vmatprep.mubr.msk.f32.mxu1 %vm236_vm1, %v5892_v6  ;;  %5000 = vmatprep.mubr.msk.f32.mxu0 %vm236_vm1, %v5622_v18  ;;  %v6687_v18 = vld [vmem:[#allocation21_spill] sm:$0xff] }
  0xce   : > { %4775 = vmatmul.mubr.msk.f32.gmra.mrb[24].mxu1 %vm236_vm1, %v5906_v9  ;;  %5001 = vmatmul.mubr.msk.f32.gmra.mrb[8].mxu0 %vm236_vm1, %v5633_v19  ;;  %v6688_v19 = vld [vmem:[#allocation9_spill] sm:$0xff] }
  0xcf   : > { %4777 = vmatprep.mubr.msk.f32.mxu1 %vm236_vm1, %v5912_v55  ;;  %5003 = vmatprep.mubr.msk.f32.mxu0 %vm236_vm1, %v5636_v20  ;;  %v6689_v20 = vld [vmem:[#allocation22_spill] sm:$0xff] }
  0xd2   : > { %4778 = vmatmul.mubr.msk.f32.gmra.mrb[26].mxu1 %vm236_vm1, %v5926_v53  ;;  %5004 = vmatmul.mubr.msk.f32.gmra.mrb[10].mxu0 %vm236_vm1, %v5647_v21  ;;  %v6690_v21 = vld [vmem:[#allocation10_spill] sm:$0xff] }
  0xd3   : > { %4780 = vmatprep.mubr.msk.f32.mxu1 %vm236_vm1, %v5932_v49  ;;  %5006 = vmatprep.mubr.msk.f32.mxu0 %vm236_vm1, %v5650_v22  ;;  %v6692_v22 = vld [vmem:[#allocation11_spill] sm:$0xff] }
  0xd6   : > { %4781 = vmatmul.mubr.msk.f32.gmra.mrb[28].mxu1 %vm236_vm1, %v5946_v45  ;;  %5007 = vmatmul.mubr.msk.f32.gmra.mrb[12].mxu0 %vm236_vm1, %v5661_v23  ;;  %v6693_v23 = vld [vmem:[#allocation24_spill] sm:$0xff] }
  0xd7   : > { %4783 = vmatprep.mubr.msk.f32.mxu1 %vm236_vm1, %v5952_v41  ;;  %5009 = vmatprep.mubr.msk.f32.mxu0 %vm236_vm1, %v5678_v26 }
  0xda   : > { %4784 = vmatmul.mubr.msk.f32.gmra.mrb[30].mxu1 %vm236_vm1, %v6679_v8  ;;  %5010 = vmatmul.mubr.msk.f32.gmra.mrb[14].mxu0 %vm236_vm1, %v6680_v11  ;;  %v6706_v8 = vld [vmem:[#allocation33_spill] sm:$0xff] }
  0xdb   : > { %4788 = vmatprep.mubr.msk.f32.mxu1 %vm236_vm1, %v6681_v12  ;;  %5012 = vmatprep.mubr.msk.f32.mxu0 %vm236_vm1, %v6682_v13  ;;  %v6698_v12 = vld [vmem:[#allocation14_spill] sm:$0xff] }
  0xde   : > { %4789 = vmatmul.mubr.msk.f32.vlgmr.msra.gmra.mrb[0].mxu1 %vm236_vm1, %v6683_v14  ;;  %5013 = vmatmul.mubr.msk.f32.gmra.mrb[16].mxu0 %vm236_vm1, %v6684_v15  ;;  %v6699_v14 = vld [vmem:[#allocation27_spill] sm:$0xff] }
  0xdf   : > { %5087 = vmatpush3.msk.msra.mxu1 %vm333_vm0, %v5527_v1  ;;  %4791 = vmatprep.mubr.msk.f32.mxu1 %vm236_vm1, %v6685_v16  ;;  %v6691_v1 = vld [vmem:[#allocation23_spill] sm:$0xff] }
  0xe0   : > { %5015 = vmatprep.mubr.msk.f32.mxu0 %vm236_vm1, %v6686_v17  ;;  %v6700_v16 = vld [vmem:[#allocation15_spill] sm:$0xff] }
  0xe2   : > { %4792 = vmatmul.mubr.msk.f32.gmra.mrb[2].mxu1 %vm236_vm1, %v6687_v18  ;;  %5016 = vmatmul.mubr.msk.f32.gmra.mrb[18].mxu0 %vm236_vm1, %v6688_v19  ;;  %v6701_v18 = vld [vmem:[#allocation28_spill] sm:$0xff] }
  0xe3   : > { %4794 = vmatprep.mubr.msk.f32.mxu1 %vm236_vm1, %v6689_v20  ;;  %5018 = vmatprep.mubr.msk.f32.mxu0 %vm236_vm1, %v6690_v21  ;;  %v6702_v20 = vld [vmem:[#allocation16_spill] sm:$0xff] }
  0xe6   : > { %4795 = vmatmul.mubr.msk.f32.gmra.mrb[4].mxu1 %vm236_vm1, %v6691_v1  ;;  %5019 = vmatmul.mubr.msk.f32.gmra.mrb[20].mxu0 %vm236_vm1, %v6692_v22  ;;  %v6300_v1 = vld [vmem:[%s5548_s9 + $0x181] sm:$0xff] }
  0xe7   : > { %4797 = vmatprep.mubr.msk.f32.mxu1 %vm236_vm1, %v6693_v23  ;;  %5021 = vmatprep.mubr.msk.f32.mxu0 %vm236_vm1, %v6694_v37  ;;  %v6703_v23 = vld [vmem:[#allocation29_spill] sm:$0xff] }
  0xea   : > { %4798 = vmatmul.mubr.msk.f32.gmra.mrb[6].mxu1 %vm236_vm1, %v6695_v3  ;;  %5022 = vmatmul.mubr.msk.f32.gmra.mrb[22].mxu0 %vm236_vm1, %v6696_v33  ;;  %v6704_v3 = vld [vmem:[#allocation17_spill] sm:$0xff] }
  0xeb   : > { %4800 = vmatprep.mubr.msk.f32.mxu1 %vm236_vm1, %v6697_v61  ;;  %5024 = vmatprep.mubr.msk.f32.mxu0 %vm236_vm1, %v6698_v12  ;;  %v6705_v61 = vld [vmem:[#allocation31_spill] sm:$0xff] }
  0xee   : > { %4801 = vmatmul.mubr.msk.f32.gmra.mrb[8].mxu1 %vm236_vm1, %v6699_v14  ;;  %5025 = vmatmul.mubr.msk.f32.gmra.mrb[24].mxu0 %vm236_vm1, %v6700_v16  ;;  %v6311_v14 = vld [vmem:[%s5548_s9 + $0x189] sm:$0xff] }
  0xef   : > { %4803 = vmatprep.mubr.msk.f32.mxu1 %vm236_vm1, %v6701_v18  ;;  %5027 = vmatprep.mubr.msk.f32.mxu0 %vm236_vm1, %v6702_v20  ;;  %v4230_v18 = vld [vmem:[%s5548_s9 + $0x199] sm:$0xff] }
  0xf2   : > { %4804 = vmatmul.mubr.msk.f32.gmra.mrb[10].mxu1 %vm236_vm1, %v6703_v23  ;;  %5028 = vmatmul.mubr.msk.f32.gmra.mrb[26].mxu0 %vm236_vm1, %v6704_v3  ;;  %v4231_v23 = vld [vmem:[%s5548_s9 + $0x1a1] sm:$0xff]  ;;  %v6707_v3 = vld [vmem:[#allocation35_spill] sm:$0xff] }
  0xf3   : > { %4806 = vmatprep.mubr.msk.f32.mxu1 %vm236_vm1, %v6705_v61  ;;  %5030 = vmatprep.mubr.msk.f32.mxu0 %vm236_vm1, %v6300_v1 }
  0xf6   : > { %4807 = vmatmul.mubr.msk.f32.gmra.mrb[12].mxu1 %vm236_vm1, %v6706_v8  ;;  %5031 = vmatmul.mubr.msk.f32.gmra.mrb[28].mxu0 %vm236_vm1, %v6311_v14 }
  0xf7   : > { %4809 = vmatprep.mubr.msk.f32.mxu1 %vm236_vm1, %v5989_v59  ;;  %5033 = vmatprep.mubr.msk.f32.mxu0 %vm236_vm1, %v4230_v18 }
  0xfa   : > { %4810 = vmatmul.mubr.msk.f32.gmra.mrb[14].mxu1 %vm236_vm1, %v6707_v3  ;;  %5034 = vmatmul.mubr.msk.f32.gmra.mrb[30].mxu0 %vm236_vm1, %v4231_v23 }
  0xfb   : > { %4812 = vmatprep.mubr.msk.f32.mxu1 %vm236_vm1, %v6003_v29  ;;  %5038 = vmatprep.mubr.msk.f32.mxu0 %vm236_vm1, %v5681_v27  ;;  %v6709_v27 = vld [vmem:[#allocation32_spill] sm:$0xff] }
  0xfc   : > { %v4296_v29 = vld [vmem:[%s5548_s9 + $0x19a] sm:$0xff] }
  0xfe   : > { %4813 = vmatmul.mubr.msk.f32.gmra.mrb[16].mxu1 %vm236_vm1, %v6019_v31  ;;  %5039 = vmatmul.mubr.msk.f32.vlgmr.msra.gmra.mrb[0].mxu0 %vm236_vm1, %v5699_v30  ;;  %v6710_v30 = vld [vmem:[#allocation17_spill] sm:$0xff]  ;;  %v6711_v31 = vld [vmem:[#allocation34_spill] sm:$0xff] }
  0xff   : > { %4815 = vmatprep.mubr.msk.f32.mxu1 %vm236_vm1, %v6024_v0  ;;  %5041 = vmatprep.mubr.msk.f32.mxu0 %vm236_vm1, %v5707_v32  ;;  %v4297_v32 = vld [vmem:[%s5548_s9 + $0x1a2] sm:$0xff] }
 0x102   : > { %4816 = vmatmul.mubr.msk.f32.gmra.mrb[18].mxu1 %vm236_vm1, %v6037_v28  ;;  %5042 = vmatmul.mubr.msk.f32.gmra.mrb[2].mxu0 %vm236_vm1, %v5723_v34 }
 0x103   : > { %4818 = vmatprep.mubr.msk.f32.mxu1 %vm236_vm1, %v6040_v5  ;;  %5044 = vmatprep.mubr.msk.f32.mxu0 %vm236_vm1, %v5729_v36 }
 0x106   : > { %4819 = vmatmul.mubr.msk.f32.gmra.mrb[20].mxu1 %vm236_vm1, %v6051_v7  ;;  %5045 = vmatmul.mubr.msk.f32.gmra.mrb[4].mxu0 %vm236_vm1, %v5743_v38 }
 0x107   : > { %4821 = vmatprep.mubr.msk.f32.mxu1 %vm236_vm1, %v6054_v10  ;;  %5047 = vmatprep.mubr.msk.f32.mxu0 %vm236_vm1, %v5749_v40 }
 0x10a   : > { %4822 = vmatmul.mubr.msk.f32.gmra.mrb[22].mxu1 %vm236_vm1, %v6065_v57  ;;  %5048 = vmatmul.mubr.msk.f32.gmra.mrb[6].mxu0 %vm236_vm1, %v5763_v42 }
 0x10b   : > { %4824 = vmatprep.mubr.msk.f32.mxu1 %vm236_vm1, %v6068_v51  ;;  %5050 = vmatprep.mubr.msk.f32.mxu0 %vm236_vm1, %v5769_v44 }
 0x10e   : > { %4825 = vmatmul.mubr.msk.f32.gmra.mrb[24].mxu1 %vm236_vm1, %v6079_v47  ;;  %5051 = vmatmul.mubr.msk.f32.gmra.mrb[8].mxu0 %vm236_vm1, %v5783_v46 }
 0x10f   : > { %4827 = vmatprep.mubr.msk.f32.mxu1 %vm236_vm1, %v6082_v43  ;;  %5053 = vmatprep.mubr.msk.f32.mxu0 %vm236_vm1, %v5789_v48 }
 0x112   : > { %4828 = vmatmul.mubr.msk.f32.gmra.mrb[26].mxu1 %vm236_vm1, %v6093_v39  ;;  %5054 = vmatmul.mubr.msk.f32.gmra.mrb[10].mxu0 %vm236_vm1, %v5803_v50 }
 0x113   : > { %4830 = vmatprep.mubr.msk.f32.mxu1 %vm236_vm1, %v6096_v35  ;;  %5056 = vmatprep.mubr.msk.f32.mxu0 %vm236_vm1, %v5809_v52  ;;  %v6469_v52 = vld [vmem:[%s6599_s2] ss:$0 sm:$0xff] }
 0x116   : > { %4831 = vmatmul.mubr.msk.f32.gmra.mrb[28].mxu1 %vm236_vm1, %v6107_v62  ;;  %5057 = vmatmul.mubr.msk.f32.gmra.mrb[12].mxu0 %vm236_vm1, %v5823_v54 }
 0x117   : > { %4833 = vmatprep.mubr.msk.f32.mxu1 %vm236_vm1, %v6162_v24  ;;  %5059 = vmatprep.mubr.msk.f32.mxu0 %vm236_vm1, %v5827_v56 }
 0x11a   : > { %4834 = vmatmul.mubr.msk.f32.gmra.mrb[30].mxu1 %vm236_vm1, %v6173_v25  ;;  %5060 = vmatmul.mubr.msk.f32.gmra.mrb[14].mxu0 %vm236_vm1, %v5838_v58 }
 0x11b   : > { %4862 = vmatprep.mubr.msk.f32.mxu1 %vm236_vm1, %v5678_v26  ;;  %5062 = vmatprep.mubr.msk.f32.mxu0 %vm236_vm1, %v5844_v60  ;;  %v6708_v26 = vld [vmem:[#allocation30_spill] sm:$0xff] }
 0x11e   : > { %4863 = vmatmul.mubr.msk.f32.vlgmr.msra.gmra.mrb[16].mxu1 %vm236_vm1, %v6680_v11  ;;  %5063 = vmatmul.mubr.msk.f32.gmra.mrb[16].mxu0 %vm236_vm1, %v5862_v63 }
 0x11f   : > { %4865 = vmatprep.mubr.msk.f32.mxu1 %vm236_vm1, %v6682_v13  ;;  %5065 = vmatprep.mubr.msk.f32.mxu0 %vm236_vm1, %v5870_v2 }
 0x122   : > { %4866 = vmatmul.mubr.msk.f32.gmra.mrb[18].mxu1 %vm236_vm1, %v6684_v15  ;;  %5066 = vmatmul.mubr.msk.f32.gmra.mrb[18].mxu0 %vm236_vm1, %v5886_v4 }
 0x123   : > { %4868 = vmatprep.mubr.msk.f32.mxu1 %vm236_vm1, %v6686_v17  ;;  %5068 = vmatprep.mubr.msk.f32.mxu0 %vm236_vm1, %v5892_v6 }
 0x126   : > { %4869 = vmatmul.mubr.msk.f32.gmra.mrb[20].mxu1 %vm236_vm1, %v6688_v19  ;;  %5069 = vmatmul.mubr.msk.f32.gmra.mrb[20].mxu0 %vm236_vm1, %v5906_v9 }
 0x127   : > { %4871 = vmatprep.mubr.msk.f32.mxu1 %vm236_vm1, %v6690_v21  ;;  %5071 = vmatprep.mubr.msk.f32.mxu0 %vm236_vm1, %v5912_v55 }
 0x12a   : > { %4872 = vmatmul.mubr.msk.f32.gmra.mrb[22].mxu1 %vm236_vm1, %v6692_v22  ;;  %5072 = vmatmul.mubr.msk.f32.gmra.mrb[22].mxu0 %vm236_vm1, %v5926_v53 }
 0x12b   : > { %4874 = vmatprep.mubr.msk.f32.mxu1 %vm236_vm1, %v6694_v37  ;;  %5074 = vmatprep.mubr.msk.f32.mxu0 %vm236_vm1, %v5932_v49 }
 0x12e   : > { %4875 = vmatmul.mubr.msk.f32.gmra.mrb[24].mxu1 %vm236_vm1, %v6696_v33  ;;  %5075 = vmatmul.mubr.msk.f32.gmra.mrb[24].mxu0 %vm236_vm1, %v5946_v45 }
 0x12f   : > { %4877 = vmatprep.mubr.msk.f32.mxu1 %vm236_vm1, %v6698_v12  ;;  %5077 = vmatprep.mubr.msk.f32.mxu0 %vm236_vm1, %v5952_v41 }
 0x132   : > { %4878 = vmatmul.mubr.msk.f32.gmra.mrb[26].mxu1 %vm236_vm1, %v6700_v16  ;;  %5078 = vmatmul.mubr.msk.f32.gmra.mrb[26].mxu0 %vm236_vm1, %v6708_v26 }
 0x133   : > { %4880 = vmatprep.mubr.msk.f32.mxu1 %vm236_vm1, %v6702_v20  ;;  %5080 = vmatprep.mubr.msk.f32.mxu0 %vm236_vm1, %v6709_v27 }
 0x136   : > { %4881 = vmatmul.mubr.msk.f32.gmra.mrb[28].mxu1 %vm236_vm1, %v6710_v30  ;;  %5081 = vmatmul.mubr.msk.f32.gmra.mrb[28].mxu0 %vm236_vm1, %v6711_v31 }
 0x137   : > { %4883 = vmatprep.mubr.msk.f32.mxu1 %vm236_vm1, %v6300_v1  ;;  %5083 = vmatprep.mubr.msk.f32.mxu0 %vm236_vm1, %v4296_v29 }
 0x13a   : > { %4884 = vmatmul.mubr.msk.f32.gmra.mrb[30].mxu1 %vm236_vm1, %v6311_v14  ;;  %5084 = vmatmul.mubr.msk.f32.gmra.mrb[30].mxu0 %vm236_vm1, %v4297_v32 }
 0x1b1   : > { %v4790_v34 = vpop.f32.mrb[0].mxu1 }
 0x1b2   : > { %v1476_v35 = vpop.f32.mrb[1].mxu1 }
 0x1b5   : > { %v4793_v36 = vpop.f32.mrb[2].mxu1 }
 0x1b6   : > { %v1486_v38 = vpop.f32.mrb[3].mxu1 }
 0x1b9   : > { %v4796_v39 = vpop.f32.mrb[4].mxu1 }
 0x1ba   : > { %v1496_v40 = vpop.f32.mrb[5].mxu1 }
 0x1bd   : > { %v4799_v41 = vpop.f32.mrb[6].mxu1 }
 0x1be   : > { %v1506_v42 = vpop.f32.mrb[7].mxu1 }
 0x1c1   : > { %v4802_v43 = vpop.f32.mrb[8].mxu1 }
 0x1c2   : > { %v1516_v44 = vpop.f32.mrb[9].mxu1 }
 0x1c5   : > { %v6453_v45 = vpop.f32.mrb[10].mxu1 }
 0x1c6   : > { %v6455_v46 = vpop.f32.mrb[11].mxu1 }
 0x1c9   : > { %v6457_v47 = vpop.f32.mrb[12].mxu1 }
 0x1ca   : > { %v6459_v48 = vpop.f32.mrb[13].mxu1 }
 0x1cd   : > { %v6461_v49 = vpop.f32.mrb[14].mxu1 }
 0x1ce   : > { %v6463_v50 = vpop.f32.mrb[15].mxu1 }
 0x1d1   : > { %v5040_v51 = vpop.f32.mrb[0].mxu0 }
 0x1d2   : > { %v5088_v53 = vadd.f32 %v5040_v51, %v4790_v34  ;;  %v3427_v54 = vpop.f32.mrb[1].mxu0 }
 0x1d3   : > { %v5089_v56 = vadd.f32 %v3427_v54, %v1476_v35 }
 0x1d4   : > { %v3626_v58 = vadd.f32 %v5088_v53, %v6469_v52 }
 0x1d5   : > { %v3625_v59 = vadd.f32 %v5089_v56, %v6469_v52  ;;  %v5043_v60 = vpop.f32.mrb[2].mxu0 }
 0x1d6   : > { %v3658_v62 = vmax.f32 %v3626_v58, 0.0  ;;  %v5090_v63 = vadd.f32 %v5043_v60, %v4793_v36  ;;  %v3437_v0 = vpop.f32.mrb[3].mxu0 }
 0x1d7   : > { %v3657_v2 = vmax.f32 %v3625_v59, 0.0  ;;  %v5091_v4 = vadd.f32 %v3437_v0, %v1486_v38 }
 0x1d8   : > { %v3690_v5 = vmin.f32 %v3658_v62, 6.0  ;;  %v3628_v6 = vadd.f32 %v5090_v63, %v6469_v52 }
 0x1d9   : > { %v3689_v7 = vmin.f32 %v3657_v2, 6.0  ;;  %v3627_v9 = vadd.f32 %v5091_v4, %v6469_v52  ;;  %v5046_v10 = vpop.f32.mrb[4].mxu0 }
 0x1da   : > { %3722 = vst [vmem:[%s6477_s6 + $0x8] sm:$0xff] %v3690_v5  ;;  %v3660_v55 = vmax.f32 %v3628_v6, 0.0  ;;  %v5092_v57 = vadd.f32 %v5046_v10, %v4796_v39  ;;  %v3447_v28 = vpop.f32.mrb[5].mxu0 }
 0x1db   : > { %3721 = vst [vmem:[%s6477_s6] sm:$0xff] %v3689_v7  ;;  %v3659_v24 = vmax.f32 %v3627_v9, 0.0  ;;  %v5093_v25 = vadd.f32 %v3447_v28, %v1496_v40 }
 0x1dc   : > { %v3692_v8 = vmin.f32 %v3660_v55, 6.0  ;;  %v3630_v11 = vadd.f32 %v5092_v57, %v6469_v52 }
 0x1dd   : > { %v3691_v13 = vmin.f32 %v3659_v24, 6.0  ;;  %v3629_v15 = vadd.f32 %v5093_v25, %v6469_v52  ;;  %v5049_v17 = vpop.f32.mrb[6].mxu0 }
 0x1de   : > { %3724 = vst [vmem:[%s6477_s6 + $0x18] sm:$0xff] %v3692_v8  ;;  %v3662_v19 = vmax.f32 %v3630_v11, 0.0  ;;  %v5094_v21 = vadd.f32 %v5049_v17, %v4799_v41  ;;  %v3457_v22 = vpop.f32.mrb[7].mxu0 }
 0x1df   : > { %3723 = vst [vmem:[%s6477_s6 + $0x10] sm:$0xff] %v3691_v13  ;;  %v3661_v37 = vmax.f32 %v3629_v15, 0.0  ;;  %v5095_v33 = vadd.f32 %v3457_v22, %v1506_v42 }
 0x1e0   : > { %v3694_v12 = vmin.f32 %v3662_v19, 6.0  ;;  %v3632_v16 = vadd.f32 %v5094_v21, %v6469_v52 }
 0x1e1   : > { %v3693_v20 = vmin.f32 %v3661_v37, 6.0  ;;  %v3631_v1 = vadd.f32 %v5095_v33, %v6469_v52  ;;  %v5052_v3 = vpop.f32.mrb[8].mxu0 }
 0x1e2   : > { %3726 = vst [vmem:[%s6477_s6 + $0x28] sm:$0xff] %v3694_v12  ;;  %v3664_v61 = vmax.f32 %v3632_v16, 0.0  ;;  %v5096_v14 = vadd.f32 %v5052_v3, %v4802_v43  ;;  %v3467_v18 = vpop.f32.mrb[9].mxu0 }
 0x1e3   : > { %3725 = vst [vmem:[%s6477_s6 + $0x20] sm:$0xff] %v3693_v20  ;;  %v3663_v23 = vmax.f32 %v3631_v1, 0.0  ;;  %v5097_v26 = vadd.f32 %v3467_v18, %v1516_v44 }
 0x1e4   : > { %v3696_v27 = vmin.f32 %v3664_v61, 6.0  ;;  %v3634_v29 = vadd.f32 %v5096_v14, %v6469_v52 }
 0x1e5   : > { %v3695_v30 = vmin.f32 %v3663_v23, 6.0  ;;  %v3633_v31 = vadd.f32 %v5097_v26, %v6469_v52  ;;  %v5055_v32 = vpop.f32.mrb[10].mxu0 }
 0x1e6   : > { %3728 = vst [vmem:[%s6477_s6 + $0x38] sm:$0xff] %v3696_v27  ;;  %v3666_v34 = vmax.f32 %v3634_v29, 0.0  ;;  %v5098_v35 = vadd.f32 %v5055_v32, %v6453_v45  ;;  %v3477_v36 = vpop.f32.mrb[11].mxu0 }
 0x1e7   : > { %3727 = vst [vmem:[%s6477_s6 + $0x30] sm:$0xff] %v3695_v30  ;;  %v3665_v38 = vmax.f32 %v3633_v31, 0.0  ;;  %v5099_v39 = vadd.f32 %v3477_v36, %v6455_v46 }
 0x1e8   : > { %v3698_v40 = vmin.f32 %v3666_v34, 6.0  ;;  %v3636_v41 = vadd.f32 %v5098_v35, %v6469_v52 }
 0x1e9   : > { %v3697_v42 = vmin.f32 %v3665_v38, 6.0  ;;  %v3635_v43 = vadd.f32 %v5099_v39, %v6469_v52  ;;  %v5058_v44 = vpop.f32.mrb[12].mxu0 }
 0x1ea   : > { %3730 = vst [vmem:[%s6477_s6 + $0x48] sm:$0xff] %v3698_v40  ;;  %v3668_v51 = vmax.f32 %v3636_v41, 0.0  ;;  %v5100_v53 = vadd.f32 %v5058_v44, %v6457_v47  ;;  %v3487_v54 = vpop.f32.mrb[13].mxu0 }
 0x1eb   : > { %3729 = vst [vmem:[%s6477_s6 + $0x40] sm:$0xff] %v3697_v42  ;;  %v3667_v45 = vmax.f32 %v3635_v43, 0.0  ;;  %v5101_v56 = vadd.f32 %v3487_v54, %v6459_v48 }
 0x1ec   : > { %v3700_v58 = vmin.f32 %v3668_v51, 6.0  ;;  %v3638_v46 = vadd.f32 %v5100_v53, %v6469_v52 }
 0x1ed   : > { %v3699_v59 = vmin.f32 %v3667_v45, 6.0  ;;  %v3637_v60 = vadd.f32 %v5101_v56, %v6469_v52  ;;  %v5061_v62 = vpop.f32.mrb[14].mxu0 }
 0x1ee   : > { %3732 = vst [vmem:[%s6477_s6 + $0x58] sm:$0xff] %v3700_v58  ;;  %v3670_v63 = vmax.f32 %v3638_v46, 0.0  ;;  %v5102_v0 = vadd.f32 %v5061_v62, %v6461_v49  ;;  %v3497_v2 = vpop.f32.mrb[15].mxu0 }
 0x1ef   : > { %3731 = vst [vmem:[%s6477_s6 + $0x50] sm:$0xff] %v3699_v59  ;;  %v3669_v47 = vmax.f32 %v3637_v60, 0.0  ;;  %v5103_v4 = vadd.f32 %v3497_v2, %v6463_v50 }
 0x1f0   : > { %v3702_v5 = vmin.f32 %v3670_v63, 6.0  ;;  %v3640_v48 = vadd.f32 %v5102_v0, %v6469_v52 }
 0x1f1   : > { %v3701_v6 = vmin.f32 %v3669_v47, 6.0  ;;  %v3639_v7 = vadd.f32 %v5103_v4, %v6469_v52  ;;  %v4864_v9 = vpop.f32.mrb[16].mxu1  ;;  %v5064_v10 = vpop.f32.mrb[16].mxu0 }
 0x1f2   : > { %3734 = vst [vmem:[%s6477_s6 + $0x68] sm:$0xff] %v3702_v5  ;;  %v3672_v55 = vmax.f32 %v3640_v48, 0.0  ;;  %v5104_v57 = vadd.f32 %v5064_v10, %v4864_v9  ;;  %v1946_v28 = vpop.f32.mrb[17].mxu1  ;;  %v3507_v49 = vpop.f32.mrb[17].mxu0 }
 0x1f3   : > { %3733 = vst [vmem:[%s6477_s6 + $0x60] sm:$0xff] %v3701_v6  ;;  %v3671_v24 = vmax.f32 %v3639_v7, 0.0  ;;  %v5105_v25 = vadd.f32 %v3507_v49, %v1946_v28 }
 0x1f4   : > { %v3704_v8 = vmin.f32 %v3672_v55, 6.0  ;;  %v3642_v50 = vadd.f32 %v5104_v57, %v6469_v52 }
 0x1f5   : > { %v3703_v11 = vmin.f32 %v3671_v24, 6.0  ;;  %v3641_v13 = vadd.f32 %v5105_v25, %v6469_v52  ;;  %v4867_v15 = vpop.f32.mrb[18].mxu1  ;;  %v5067_v17 = vpop.f32.mrb[18].mxu0 }
 0x1f6   : > { %3736 = vst [vmem:[%s6477_s6 + $0x78] sm:$0xff] %v3704_v8  ;;  %v3674_v19 = vmax.f32 %v3642_v50, 0.0  ;;  %v5106_v21 = vadd.f32 %v5067_v17, %v4867_v15  ;;  %v1956_v22 = vpop.f32.mrb[19].mxu1  ;;  %v3517_v37 = vpop.f32.mrb[19].mxu0 }
 0x1f7   : > { %3735 = vst [vmem:[%s6477_s6 + $0x70] sm:$0xff] %v3703_v11  ;;  %v3673_v33 = vmax.f32 %v3641_v13, 0.0  ;;  %v5107_v12 = vadd.f32 %v3517_v37, %v1956_v22 }
 0x1f8   : > { %v3706_v16 = vmin.f32 %v3674_v19, 6.0  ;;  %v3644_v20 = vadd.f32 %v5106_v21, %v6469_v52 }
 0x1f9   : > { %v3705_v1 = vmin.f32 %v3673_v33, 6.0  ;;  %v3643_v3 = vadd.f32 %v5107_v12, %v6469_v52  ;;  %v4870_v61 = vpop.f32.mrb[20].mxu1  ;;  %v5070_v14 = vpop.f32.mrb[20].mxu0 }
 0x1fa   : > { %3738 = vst [vmem:[%s6477_s6 + $0x88] sm:$0xff] %v3706_v16  ;;  %v3676_v18 = vmax.f32 %v3644_v20, 0.0  ;;  %v5108_v23 = vadd.f32 %v5070_v14, %v4870_v61  ;;  %v1966_v26 = vpop.f32.mrb[21].mxu1  ;;  %v3527_v27 = vpop.f32.mrb[21].mxu0 }
 0x1fb   : > { %3737 = vst [vmem:[%s6477_s6 + $0x80] sm:$0xff] %v3705_v1  ;;  %v3675_v29 = vmax.f32 %v3643_v3, 0.0  ;;  %v5109_v30 = vadd.f32 %v3527_v27, %v1966_v26 }
 0x1fc   : > { %v3708_v31 = vmin.f32 %v3676_v18, 6.0  ;;  %v3646_v32 = vadd.f32 %v5108_v23, %v6469_v52 }
 0x1fd   : > { %v3707_v34 = vmin.f32 %v3675_v29, 6.0  ;;  %v3645_v35 = vadd.f32 %v5109_v30, %v6469_v52  ;;  %v4873_v36 = vpop.f32.mrb[22].mxu1  ;;  %v5073_v38 = vpop.f32.mrb[22].mxu0 }
 0x1fe   : > { %3740 = vst [vmem:[%s6477_s6 + $0x98] sm:$0xff] %v3708_v31  ;;  %v3678_v39 = vmax.f32 %v3646_v32, 0.0  ;;  %v5110_v40 = vadd.f32 %v5073_v38, %v4873_v36  ;;  %v1976_v41 = vpop.f32.mrb[23].mxu1  ;;  %v3537_v42 = vpop.f32.mrb[23].mxu0 }
 0x1ff   : > { %3739 = vst [vmem:[%s6477_s6 + $0x90] sm:$0xff] %v3707_v34  ;;  %v3677_v43 = vmax.f32 %v3645_v35, 0.0  ;;  %v5111_v44 = vadd.f32 %v3537_v42, %v1976_v41 }
 0x200   : > { %v3710_v51 = vmin.f32 %v3678_v39, 6.0  ;;  %v3648_v53 = vadd.f32 %v5110_v40, %v6469_v52 }
 0x201   : > { %v3709_v54 = vmin.f32 %v3677_v43, 6.0  ;;  %v3647_v45 = vadd.f32 %v5111_v44, %v6469_v52  ;;  %v4876_v56 = vpop.f32.mrb[24].mxu1  ;;  %v5076_v58 = vpop.f32.mrb[24].mxu0 }
 0x202   : > { %3742 = vst [vmem:[%s6477_s6 + $0xa8] sm:$0xff] %v3710_v51  ;;  %v3680_v46 = vmax.f32 %v3648_v53, 0.0  ;;  %v5112_v59 = vadd.f32 %v5076_v58, %v4876_v56  ;;  %v1986_v60 = vpop.f32.mrb[25].mxu1  ;;  %v3547_v62 = vpop.f32.mrb[25].mxu0 }
 0x203   : > { %3741 = vst [vmem:[%s6477_s6 + $0xa0] sm:$0xff] %v3709_v54  ;;  %v3679_v63 = vmax.f32 %v3647_v45, 0.0  ;;  %v5113_v0 = vadd.f32 %v3547_v62, %v1986_v60 }
 0x204   : > { %v3712_v2 = vmin.f32 %v3680_v46, 6.0  ;;  %v3650_v47 = vadd.f32 %v5112_v59, %v6469_v52 }
 0x205   : > { %v3711_v4 = vmin.f32 %v3679_v63, 6.0  ;;  %v3649_v5 = vadd.f32 %v5113_v0, %v6469_v52  ;;  %v4879_v48 = vpop.f32.mrb[26].mxu1  ;;  %v5079_v6 = vpop.f32.mrb[26].mxu0 }
 0x206   : > { %3744 = vst [vmem:[%s6477_s6 + $0xb8] sm:$0xff] %v3712_v2  ;;  %v3682_v7 = vmax.f32 %v3650_v47, 0.0  ;;  %v5114_v9 = vadd.f32 %v5079_v6, %v4879_v48  ;;  %v1996_v10 = vpop.f32.mrb[27].mxu1  ;;  %v3557_v55 = vpop.f32.mrb[27].mxu0 }
 0x207   : > { %3743 = vst [vmem:[%s6477_s6 + $0xb0] sm:$0xff] %v3711_v4  ;;  %v3681_v57 = vmax.f32 %v3649_v5, 0.0  ;;  %v5115_v28 = vadd.f32 %v3557_v55, %v1996_v10 }
 0x208   : > { %v3714_v49 = vmin.f32 %v3682_v7, 6.0  ;;  %v3652_v24 = vadd.f32 %v5114_v9, %v6469_v52 }
 0x209   : > { %v3713_v25 = vmin.f32 %v3681_v57, 6.0  ;;  %v3651_v8 = vadd.f32 %v5115_v28, %v6469_v52  ;;  %v4882_v50 = vpop.f32.mrb[28].mxu1  ;;  %v5082_v11 = vpop.f32.mrb[28].mxu0 }
 0x20a   : > { %3746 = vst [vmem:[%s6477_s6 + $0xc8] sm:$0xff] %v3714_v49  ;;  %v3684_v13 = vmax.f32 %v3652_v24, 0.0  ;;  %v5116_v15 = vadd.f32 %v5082_v11, %v4882_v50  ;;  %v2006_v17 = vpop.f32.mrb[29].mxu1  ;;  %v3567_v19 = vpop.f32.mrb[29].mxu0 }
 0x20b   : > { %3745 = vst [vmem:[%s6477_s6 + $0xc0] sm:$0xff] %v3713_v25  ;;  %v3683_v21 = vmax.f32 %v3651_v8, 0.0  ;;  %v5117_v22 = vadd.f32 %v3567_v19, %v2006_v17 }
 0x20c   : > { %v3716_v37 = vmin.f32 %v3684_v13, 6.0  ;;  %v3654_v33 = vadd.f32 %v5116_v15, %v6469_v52 }
 0x20d   : > { %v3715_v12 = vmin.f32 %v3683_v21, 6.0  ;;  %v3653_v16 = vadd.f32 %v5117_v22, %v6469_v52  ;;  %v4885_v20 = vpop.f32.mrb[30].mxu1  ;;  %v5085_v1 = vpop.f32.mrb[30].mxu0 }
 0x20e   : > { %3748 = vst [vmem:[%s6477_s6 + $0xd8] sm:$0xff] %v3716_v37  ;;  %v3686_v3 = vmax.f32 %v3654_v33, 0.0  ;;  %v5118_v61 = vadd.f32 %v5085_v1, %v4885_v20  ;;  %v2016_v14 = vpop.f32.mrb[31].mxu1  ;;  %v3577_v18 = vpop.f32.mrb[31].mxu0 }
 0x20f   : > { %3747 = vst [vmem:[%s6477_s6 + $0xd0] sm:$0xff] %v3715_v12  ;;  %v3685_v23 = vmax.f32 %v3653_v16, 0.0  ;;  %v5119_v26 = vadd.f32 %v3577_v18, %v2016_v14 }
 0x210   : > { %v3718_v27 = vmin.f32 %v3686_v3, 6.0  ;;  %v3656_v29 = vadd.f32 %v5118_v61, %v6469_v52 }
 0x211   : > { %v3717_v30 = vmin.f32 %v3685_v23, 6.0  ;;  %v3655_v31 = vadd.f32 %v5119_v26, %v6469_v52 }
 0x212   : > { %3750 = vst [vmem:[%s6477_s6 + $0xe8] sm:$0xff] %v3718_v27  ;;  %v3688_v32 = vmax.f32 %v3656_v29, 0.0 }
 0x213   : > { %3749 = vst [vmem:[%s6477_s6 + $0xe0] sm:$0xff] %v3717_v30  ;;  %v3687_v34 = vmax.f32 %v3655_v31, 0.0 }
 0x214   : > { %v3720_v35 = vmin.f32 %v3688_v32, 6.0 }
 0x215   : > { %v3719_v36 = vmin.f32 %v3687_v34, 6.0 }
 0x216   : > { %3752 = vst [vmem:[%s6477_s6 + $0xf8] sm:$0xff] %v3720_v35 }
 0x217   : > { %3751 = vst [vmem:[%s6477_s6 + $0xf0] sm:$0xff] %v3719_v36 }
 0x218   : > { %5399 = shalt.err (!%p5396_p3)
}
 0x219   : > { %s5400_s25 = scalar_lea.hbm %s6548_s11, 4096  ;;  %s5404_s28 = scalar_lea.hbm %s6600_s3, 8192 }
 0x21a   : > { %p5401_p4 = scmp.ne.s32.totalorder %s6548_s11, %s5400_s25  ;;  %p5405_p9 = scmp.lt.u32.totalorder %s6548_s11, %s6600_s3 }
 0x21b   : > { %p5406_p10 = scmp.lt.u32.totalorder %s5404_s28, %s5400_s25  ;;  %p5408_p12 = scmp.lt.u32.totalorder %s5400_s25, %s6548_s11 }
 0x21c   : > { %p5402_p7 = pnand %p5401_p4, %p5511_p5 }
 0x21d   : > { %p5407_p11 = por %p5406_p10, %p5405_p9 }
 0x21e   : > { %p5403_p8 = pneg %p5402_p7 }
 0x21f   : > { %p5409_p13 = por %p5408_p12, %p5407_p11 }
 0x221   : > { %p5410_p0 = pnand %p5409_p13, %p5403_p8 }
 0x223   : > { %5413 = shalt.err (!%p5410_p0)
}
 0x224   : > { %s5451_s4 = smov 128   ;;  %s5452_s5 = smov 8  }
 0x225   : > { %5345 = dma.vmem_to_hbm [thread:$0]  (%p5511_p5), %s6550_s8, 4096, %s6548_s11, %s6556_s16, %s5451_s4, %s5451_s4, %s5452_s5  }
 0x226 PF: > { %p5351_p1 = scmp.ge.s32.totalorder %s5448_s15, 2  ;;  %s3782_s6 = sand.u32 1, %s5436_s12  }
 0x227   : > { %s3783_s7 = scalar_lea.sflag [#allocation3], %s3782_s6 }
 0x228   : > { %p5348_p2 = pnand %p5351_p1, %p5515_p6 }
 0x22a   : > { %5431 = dma.done.wait (!%p5348_p2), %s3783_s7, 4096  }
 0x22b   : > { %5433 = vsyncadd (!%p5348_p2), %s3783_s7, 4294963200  ;;  %p13_p3 = scmp.ge.s32.totalorder %s5498_s18, 4   ;;  %s6712_s12 = smov %s5440_s13 }
 0x22c   : > { %s6713_s13 = smov %s5444_s14  ;;  %s6714_s14 = smov %s5509_s21 }
 0x22d   : > { %s6715_s15 = smov %s5498_s18  ;;  %15 = sbr.rel (!%p13_p3) target bundleno = 3 (0x3), region = 77 }
 0x234   :  { %3788 = vsyncpa [#allocation3], 1 }
 0x235   :  { %3790 = vsyncpa [#allocation3 + $0x1], 1 }

</bundles_post_ra>
